<compile_context>
chip_gen: v7x
topology: tpu7x:2x2x1
jax: 0.10.0
libtpu: 0.0.40
codegen_flags: <defaults>
</compile_context>

<pallas_src>
import functools
import math

import jax
import jax.numpy as jnp
from jax import lax
from jax.experimental import pallas as pl
from jax.experimental.pallas import tpu as pltpu

EXPANSION = 4                      # Bottleneck expansion
DT_ACT = jnp.bfloat16              # activation storage dtype
_VMEM_LIMIT = 48 * 1024 * 1024     # safe on v5e/v6e (128 MiB) and v7x (64 MiB)


def _round_up(x, m):
    return (x + m - 1) // m * m


# ----------------------------- matmul + bias epilogue -----------------------

def _matmul_bias_kernel(a_ref, b_ref, bias_ref, o_ref, acc_ref):
    @pl.when(pl.program_id(2) == 0)
    def _init():
        acc_ref[...] = jnp.zeros_like(acc_ref)

    acc_ref[...] += jnp.dot(a_ref[...], b_ref[...],
                            preferred_element_type=jnp.float32)

    @pl.when(pl.program_id(2) == pl.num_programs(2) - 1)
    def _store():
        o_ref[...] = (acc_ref[...] + bias_ref[...]).astype(o_ref.dtype)


def pallas_matmul(a, b, bias=None, out_dtype=DT_ACT):
    """(M,K) @ (K,N) on the MXU, bf16 inputs / f32 accumulate, bias fused."""
    M, K = a.shape
    K2, N = b.shape
    assert K == K2
    Mr, Nr, Kr = _round_up(M, 16), _round_up(N, 128), _round_up(K, 128)
    tm = Mr if Mr <= 512 else 256
    tn = Nr if Nr <= 512 else 256
    tk = Kr if Kr <= 2048 else 512
    Mp, Np, Kp = _round_up(M, tm), _round_up(N, tn), _round_up(K, tk)

    a_p = a.astype(jnp.bfloat16)
    if (Mp, Kp) != (M, K):
        a_p = jnp.pad(a_p, ((0, Mp - M), (0, Kp - K)))
    b_p = b.astype(jnp.bfloat16)
    if (Kp, Np) != (K, N):
        b_p = jnp.pad(b_p, ((0, Kp - K), (0, Np - N)))
    if bias is None:
        bias_p = jnp.zeros((1, Np), jnp.float32)
    else:
        bias_p = jnp.pad(bias.astype(jnp.float32), (0, Np - N)).reshape(1, Np)

    out = pl.pallas_call(
        _matmul_bias_kernel,
        out_shape=jax.ShapeDtypeStruct((Mp, Np), out_dtype),
        grid_spec=pltpu.PrefetchScalarGridSpec(
            num_scalar_prefetch=0,
            grid=(Mp // tm, Np // tn, Kp // tk),
            in_specs=[pl.BlockSpec((tm, tk), lambda i, j, k: (i, k)),
                      pl.BlockSpec((tk, tn), lambda i, j, k: (k, j)),
                      pl.BlockSpec((1, tn), lambda i, j, k: (0, j))],
            out_specs=pl.BlockSpec((tm, tn), lambda i, j, k: (i, j)),
            scratch_shapes=[pltpu.VMEM((tm, tn), jnp.float32)]),
        compiler_params=pltpu.CompilerParams(
            dimension_semantics=("parallel", "parallel", "arbitrary"),
            vmem_limit_bytes=_VMEM_LIMIT),
    )(a_p, b_p, bias_p)
    if (Mp, Np) != (M, N):
        out = out[:M, :N]
    return out


# ----------------------- BatchNorm: fused stats & apply ----------------------

def _ew_tile(M, C):
    """Row-tile size for elementwise kernels (budget ~1 MiB per buffer)."""
    tm = max(16, min(1024, ((1 << 20) // max(C, 1)) // 16 * 16))
    return min(tm, _round_up(M, 16))


def _bn_stats_kernel(x_ref, sum_ref, sq_ref):
    @pl.when(pl.program_id(0) == 0)
    def _init():
        sum_ref[...] = jnp.zeros_like(sum_ref)
        sq_ref[...] = jnp.zeros_like(sq_ref)

    xb = x_ref[...].astype(jnp.float32)
    sum_ref[...] += jnp.sum(xb, axis=0, keepdims=True)
    sq_ref[...] += jnp.sum(xb * xb, axis=0, keepdims=True)


def pallas_bn_stats(x2d):
    """Single-pass per-channel (sum, sum_sq) over (M, C)."""
    M, C = x2d.shape
    tm = _ew_tile(M, C)
    Mp = _round_up(M, tm)
    x_p = jnp.pad(x2d, ((0, Mp - M), (0, 0))) if Mp != M else x2d
    ssum, sqsum = pl.pallas_call(
        _bn_stats_kernel,
        out_shape=(jax.ShapeDtypeStruct((1, C), jnp.float32),
                   jax.ShapeDtypeStruct((1, C), jnp.float32)),
        grid=(Mp // tm,),
        in_specs=[pl.BlockSpec((tm, C), lambda i: (i, 0))],
        out_specs=(pl.BlockSpec((1, C), lambda i: (0, 0)),
                   pl.BlockSpec((1, C), lambda i: (0, 0))),
        compiler_params=pltpu.CompilerParams(
            dimension_semantics=("arbitrary",),
            vmem_limit_bytes=_VMEM_LIMIT),
    )(x_p)
    return ssum[0], sqsum[0]


def bn_scale_shift(x2d, gamma, beta, eps=1e-5):
    """Train-mode BatchNorm batch statistics -> per-channel (scale, shift)."""
    M = x2d.shape[0]
    ssum, sqsum = pallas_bn_stats(x2d)
    mean = ssum / M
    var = jnp.maximum(sqsum / M - mean * mean, 0.0)
    scale = gamma / jnp.sqrt(var + eps)
    shift = beta - mean * scale
    return scale, shift


def _bn_act_kernel(x_ref, s_ref, t_ref, o_ref, *, relu):
    y = x_ref[...].astype(jnp.float32) * s_ref[...] + t_ref[...]
    if relu:
        y = jnp.maximum(y, 0.0)
    o_ref[...] = y.astype(o_ref.dtype)


def _bn_res_act_kernel(x_ref, s_ref, t_ref, r_ref, rs_ref, rt_ref, o_ref, *, relu):
    y = x_ref[...].astype(jnp.float32) * s_ref[...] + t_ref[...]
    y = y + (r_ref[...].astype(jnp.float32) * rs_ref[...] + rt_ref[...])
    if relu:
        y = jnp.maximum(y, 0.0)
    o_ref[...] = y.astype(o_ref.dtype)


def pallas_bn_apply(x2d, scale, shift, relu, residual=None,
                    res_scale=None, res_shift=None, out_dtype=DT_ACT):
    """Tiled fused BN-apply (+ optional residual with its own BN) (+ ReLU)."""
    M, C = x2d.shape
    tm = _ew_tile(M, C)
    Mp = _round_up(M, tm)

    def padm(a):
        return jnp.pad(a, ((0, Mp - M), (0, 0))) if Mp != M else a

    x_p = padm(x2d)
    s2 = scale.reshape(1, C).astype(jnp.float32)
    t2 = shift.reshape(1, C).astype(jnp.float32)
    row = pl.BlockSpec((tm, C), lambda i: (i, 0))
    vec = pl.BlockSpec((1, C), lambda i: (0, 0))
    cp = pltpu.CompilerParams(dimension_semantics=("parallel",),
                              vmem_limit_bytes=_VMEM_LIMIT)

    if residual is None:
        out = pl.pallas_call(
            functools.partial(_bn_act_kernel, relu=relu),
            out_shape=jax.ShapeDtypeStruct((Mp, C), out_dtype),
            grid=(Mp // tm,),
            in_specs=[row, vec, vec],
            out_specs=row,
            compiler_params=cp,
        )(x_p, s2, t2)
    else:
        r_p = padm(residual)
        rs = jnp.ones((C,), jnp.float32) if res_scale is None else res_scale
        rt = jnp.zeros((C,), jnp.float32) if res_shift is None else res_shift
        out = pl.pallas_call(
            functools.partial(_bn_res_act_kernel, relu=relu),
            out_shape=jax.ShapeDtypeStruct((Mp, C), out_dtype),
            grid=(Mp // tm,),
            in_specs=[row, vec, vec, row, vec, vec],
            out_specs=row,
            compiler_params=cp,
        )(x_p, s2, t2, r_p,
          rs.reshape(1, C).astype(jnp.float32),
          rt.reshape(1, C).astype(jnp.float32))
    return out[:M] if Mp != M else out


def bn_act(x, gamma, beta, relu):
    shp = x.shape
    x2 = x.reshape(-1, shp[-1])
    s, t = bn_scale_shift(x2, gamma, beta)
    return pallas_bn_apply(x2, s, t, relu=relu).reshape(shp)


# ------------------- non-local attention (flash style) -----------------------

def _flash_attn_kernel(th_ref, ph_ref, g_ref, o_ref, m_sc, l_sc, acc_sc,
                       *, kv_len, blk_kv):
    ki = pl.program_id(2)

    @pl.when(ki == 0)
    def _init():
        m_sc[...] = jnp.full_like(m_sc, -jnp.inf)
        l_sc[...] = jnp.zeros_like(l_sc)
        acc_sc[...] = jnp.zeros_like(acc_sc)

    # scores = theta @ phi^T (contract feature dim)
    s = lax.dot_general(th_ref[...], ph_ref[...],
                        (((1,), (1,)), ((), ())),
                        preferred_element_type=jnp.float32)      # (tq, tkv)
    col = ki * blk_kv + lax.broadcasted_iota(jnp.int32, s.shape, 1)
    s = jnp.where(col < kv_len, s, -jnp.inf)                     # mask kv padding

    m_prev = m_sc[...]
    m_new = jnp.maximum(m_prev, jnp.max(s, axis=-1, keepdims=True))
    alpha = jnp.exp(m_prev - m_new)
    p = jnp.exp(s - m_new)
    l_sc[...] = alpha * l_sc[...] + jnp.sum(p, axis=-1, keepdims=True)
    acc_sc[...] = alpha * acc_sc[...] + jnp.dot(
        p.astype(g_ref.dtype), g_ref[...], preferred_element_type=jnp.float32)
    m_sc[...] = m_new

    @pl.when(ki == pl.num_programs(2) - 1)
    def _fin():
        o_ref[...] = (acc_sc[...] *
                      pl.reciprocal(l_sc[...], approx=True)).astype(o_ref.dtype)


def pallas_flash_attention(theta, phi, g):
    """softmax(theta @ phi^T) @ g with online softmax. Inputs: (N, L, Ci)."""
    N, L, Ci = theta.shape
    t = min(128, _round_up(L, 16))
    Lp = _round_up(L, t)

    def padL(a):
        return jnp.pad(a, ((0, 0), (0, Lp - L), (0, 0))) if Lp != L else a

    th, ph, gg = padL(theta), padL(phi), padL(g)
    kern = functools.partial(_flash_attn_kernel, kv_len=L, blk_kv=t)
    out = pl.pallas_call(
        kern,
        out_shape=jax.ShapeDtypeStruct((N, Lp, Ci), DT_ACT),
        grid=(N, Lp // t, Lp // t),
        in_specs=[pl.BlockSpec((None, t, Ci), lambda n, qi, ki: (n, qi, 0)),
                  pl.BlockSpec((None, t, Ci), lambda n, qi, ki: (n, ki, 0)),
                  pl.BlockSpec((None, t, Ci), lambda n, qi, ki: (n, ki, 0))],
        out_specs=pl.BlockSpec((None, t, Ci), lambda n, qi, ki: (n, qi, 0)),
        scratch_shapes=[pltpu.VMEM((t, 1), jnp.float32),
                        pltpu.VMEM((t, 1), jnp.float32),
                        pltpu.VMEM((t, Ci), jnp.float32)],
        compiler_params=pltpu.CompilerParams(
            dimension_semantics=("parallel", "parallel", "arbitrary"),
            vmem_limit_bytes=_VMEM_LIMIT),
    )(th, ph, gg)
    return out[:, :L, :] if Lp != L else out


# ----------------------------- building blocks ------------------------------

def conv3d(x, w, stride, padding, bias=None, out_dtype=DT_ACT):
    """x: (N,T,H,W,C); w: (Cout,Cin,Kt,Kh,Kw) (PyTorch layout)."""
    Cout, Cin, Kt, Kh, Kw = w.shape
    st, sh, sw = stride
    pt, ph, pw = padding
    if (Kt, Kh, Kw) == (1, 1, 1) and (pt, ph, pw) == (0, 0, 0):
        # 1x1x1 conv (optionally strided): plain (strided-sliced) matmul.
        if (st, sh, sw) != (1, 1, 1):
            x = x[:, ::st, ::sh, ::sw, :]
        N, T, H, W_, C = x.shape
        out = pallas_matmul(x.reshape(-1, C), w.reshape(Cout, Cin).T,
                            bias=bias, out_dtype=out_dtype)
        return out.reshape(N, T, H, W_, Cout)
    # im2col path; patch feature ordering is input-channel-major then
    # (Kt,Kh,Kw) row-major, matching w.reshape(Cout, Cin*Kt*Kh*Kw).
    patches = lax.conv_general_dilated_patches(
        x, (Kt, Kh, Kw), tuple(stride),
        [(pt, pt), (ph, ph), (pw, pw)],
        dimension_numbers=('NDHWC', 'DHWIO', 'NDHWC'))
    Nb, To, Ho, Wo, KK = patches.shape
    out = pallas_matmul(patches.reshape(-1, KK), w.reshape(Cout, -1).T,
                        bias=bias, out_dtype=out_dtype)
    return out.reshape(Nb, To, Ho, Wo, Cout)


def maxpool3d(x, kernel, stride):
    init = jnp.array(-jnp.inf, dtype=x.dtype)
    return lax.reduce_window(
        x, init, lax.max,
        (1,) + tuple(kernel) + (1,),
        (1,) + tuple(stride) + (1,), 'VALID')


def nonlocal_forward(x, p):
    """Embedded-Gaussian non-local block; W conv + BN fused with residual add."""
    N, T, H, W, C = x.shape
    L = T * H * W
    inter = p['theta_w'].shape[0]
    x2 = x.reshape(N * L, C)

    # fused theta/phi/g projection: one matmul over concatenated weights
    w_cat = jnp.concatenate([p['theta_w'].reshape(inter, C),
                             p['phi_w'].reshape(inter, C),
                             p['g_w'].reshape(inter, C)], axis=0).T   # (C, 3*inter)
    b_cat = jnp.concatenate([p['theta_b'], p['phi_b'], p['g_b']])
    proj = pallas_matmul(x2, w_cat, bias=b_cat, out_dtype=DT_ACT)
    proj = proj.reshape(N, L, 3 * inter)
    theta = proj[:, :, :inter]
    phi = proj[:, :, inter:2 * inter]
    g = proj[:, :, 2 * inter:]

    y = pallas_flash_attention(theta, phi, g)                         # (N, L, inter)
    wy = pallas_matmul(y.reshape(N * L, inter),
                       p['W_w'].reshape(C, inter).T,
                       bias=p['W_b'], out_dtype=DT_ACT)               # (N*L, C)
    sW, tW = bn_scale_shift(wy, p['W_bn_g'], p['W_bn_b'])
    z = pallas_bn_apply(wy, sW, tW, relu=False, residual=x2)          # BN(Wy) + x
    return z.reshape(N, T, H, W, C)


def bottleneck_forward(x, p):
    stride, temp_conv, addnon = p['stride'], p['temp_conv'], p['addnon']

    out = conv3d(x, p['conv1_w'], (1, 1, 1), (temp_conv, 0, 0))
    out = bn_act(out, p['bn1_g'], p['bn1_b'], relu=True)
    out = conv3d(out, p['conv2_w'], (1, stride, stride), (0, 1, 1))
    out = bn_act(out, p['bn2_g'], p['bn2_b'], relu=True)
    out = conv3d(out, p['conv3_w'], (1, 1, 1), (0, 0, 0))

    shp = out.shape
    C3 = shp[-1]
    out2 = out.reshape(-1, C3)
    s3, t3 = bn_scale_shift(out2, p['bn3_g'], p['bn3_b'])

    if 'down_w' in p:
        res = conv3d(x, p['down_w'], (1, stride, stride), (0, 0, 0))
        res2 = res.reshape(-1, C3)
        sd, td = bn_scale_shift(res2, p['down_g'], p['down_b'])
    else:
        res2 = x.reshape(-1, C3)
        sd, td = None, None

    # fused: relu( bn3(conv3) + bn_d(downsample) )  (or + identity residual)
    out = pallas_bn_apply(out2, s3, t3, relu=True, residual=res2,
                          res_scale=sd, res_shift=td).reshape(shp)
    if addnon:
        out = nonlocal_forward(out, p['nl'])
    return out


# ----------------------------- parameter init --------------------------------

class _Keys:
    def __init__(self, seed):
        self._key = jax.random.PRNGKey(seed)

    def __call__(self):
        self._key, sub = jax.random.split(self._key)
        return sub


def _kaiming_conv(key, shape):
    # kaiming_normal_(mode='fan_out') for conv weight (Cout, Cin, Kt, Kh, Kw)
    fan_out = shape[0] * shape[2] * shape[3] * shape[4]
    std = math.sqrt(2.0 / fan_out)
    return std * jax.random.normal(key, shape, jnp.float32)


def make_bottleneck_params(keys, inplanes, planes, stride, temp_conv, addnon):
    p = {
        'stride': stride, 'temp_conv': temp_conv, 'addnon': addnon,
        'conv1_w': _kaiming_conv(keys(), (planes, inplanes, 1 + 2 * temp_conv, 1, 1)),
        'bn1_g': jnp.ones((planes,), jnp.float32),
        'bn1_b': jnp.zeros((planes,), jnp.float32),
        'conv2_w': _kaiming_conv(keys(), (planes, planes, 1, 3, 3)),
        'bn2_g': jnp.ones((planes,), jnp.float32),
        'bn2_b': jnp.zeros((planes,), jnp.float32),
        'conv3_w': _kaiming_conv(keys(), (planes * EXPANSION, planes, 1, 1, 1)),
        'bn3_g': jnp.ones((planes * EXPANSION,), jnp.float32),
        'bn3_b': jnp.zeros((planes * EXPANSION,), jnp.float32),
    }
    if stride != 1 or inplanes != planes * EXPANSION:
        p['down_w'] = _kaiming_conv(keys(), (planes * EXPANSION, inplanes, 1, 1, 1))
        p['down_g'] = jnp.ones((planes * EXPANSION,), jnp.float32)
        p['down_b'] = jnp.zeros((planes * EXPANSION,), jnp.float32)
    if addnon:
        c = planes * EXPANSION
        inter = c // 2
        p['nl'] = {
            'theta_w': _kaiming_conv(keys(), (inter, c, 1, 1, 1)),
            'theta_b': jnp.zeros((inter,), jnp.float32),
            'phi_w': _kaiming_conv(keys(), (inter, c, 1, 1, 1)),
            'phi_b': jnp.zeros((inter,), jnp.float32),
            'g_w': _kaiming_conv(keys(), (inter, c, 1, 1, 1)),
            'g_b': jnp.zeros((inter,), jnp.float32),
            'W_w': _kaiming_conv(keys(), (c, inter, 1, 1, 1)),
            'W_b': jnp.zeros((c,), jnp.float32),
            'W_bn_g': jnp.ones((c,), jnp.float32),
            'W_bn_b': jnp.zeros((c,), jnp.float32),
        }
    return p


def make_i3d_params(layers, temp_conv, nonlocal_block, frame_num, num_classes, seed=0):
    keys = _Keys(seed)
    temp_stride = 2 if frame_num == 32 else 1
    params = {
        'temp_stride': temp_stride,
        'conv1_w': _kaiming_conv(keys(), (64, 3, 5, 7, 7)),
        'bn1_g': jnp.ones((64,), jnp.float32),
        'bn1_b': jnp.zeros((64,), jnp.float32),
    }
    inplanes = 64
    planes_list = [64, 128, 256, 512]
    strides = [1, 2, 2, 2]
    for li in range(4):
        blocks = []
        for bi in range(layers[li]):
            stride = strides[li] if bi == 0 else 1
            blocks.append(make_bottleneck_params(
                keys, inplanes, planes_list[li], stride,
                temp_conv[li][bi], nonlocal_block[li][bi]))
            inplanes = planes_list[li] * EXPANSION
        params['layer%d' % (li + 1)] = blocks
    params['fc_w'] = 0.01 * jax.random.normal(
        keys(), (num_classes, 512 * EXPANSION), jnp.float32)
    params['fc_b'] = jnp.zeros((num_classes,), jnp.float32)
    return params


# ------------------------------- forward -------------------------------------

def i3d_forward(params, x_ncthw, dropout_key):
    """Mirrors I3DResNet.forward in 'train' mode. Input is NCDHW (PyTorch)."""
    x = jnp.transpose(x_ncthw, (0, 2, 3, 4, 1)).astype(DT_ACT)   # -> NDHWC bf16
    ts = params['temp_stride']
    x = conv3d(x, params['conv1_w'], (ts, 2, 2), (2, 3, 3))
    x = bn_act(x, params['bn1_g'], params['bn1_b'], relu=True)
    x = maxpool3d(x, (ts, 3, 3), (ts, 2, 2))
    for blk in params['layer1']:
        x = bottleneck_forward(x, blk)
    x = maxpool3d(x, (2, 1, 1), (2, 1, 1))                        # temporalpool
    for blk in params['layer2']:
        x = bottleneck_forward(x, blk)
    for blk in params['layer3']:
        x = bottleneck_forward(x, blk)
    for blk in params['layer4']:
        x = bottleneck_forward(x, blk)
    x = jnp.mean(x.astype(jnp.float32), axis=(1, 2, 3))           # avgpool+flatten
    # TODO(synk): train-mode Dropout uses the JAX RNG stream (differs from torch RNG).
    keep = jax.random.bernoulli(dropout_key, 0.5, x.shape)
    x = jnp.where(keep, x * 2.0, 0.0)
    return pallas_matmul(x, params['fc_w'].T, bias=params['fc_b'],
                         out_dtype=jnp.float32)


# --------------------------------- main ---------------------------------------

if __name__ == "__main__":
    # Small I3D-ResNet config: 1 Bottleneck per stage, non-local block in layer2.
    layers = [1, 1, 1, 1]
    temp_conv = [[1], [1], [1], [0]]
    nonlocal_block = [[False], [True], [False], [False]]
    frame_num = 8            # -> temp_stride = 1
    num_classes = 16

    params = make_i3d_params(layers, temp_conv, nonlocal_block,
                             frame_num, num_classes, seed=0)

    key = jax.random.PRNGKey(0)
    xkey, dkey = jax.random.split(key)
    x = jax.random.normal(xkey, (1, 3, frame_num, 32, 32), jnp.float32)  # NCDHW

    out = i3d_forward(params, x, dkey)
    out = jax.block_until_ready(out)
    assert out.shape == (1, num_classes)
    assert bool(jnp.all(jnp.isfinite(out)))
    print("KERNEL_OK")
</pallas_src>

<mosaic_0001>
module attributes {stable_mosaic.version = 11 : i64} {
  func.func @_matmul_bias_kernel(%arg0: i32, %arg1: i32, %arg2: i32, %arg3: memref<256x768xbf16, #tpu.memory_space<vmem>>, %arg4: memref<768x128xbf16, #tpu.memory_space<vmem>>, %arg5: memref<1x128xf32, #tpu.memory_space<vmem>>, %arg6: memref<256x128xbf16, #tpu.memory_space<vmem>>, %arg7: memref<256x128xf32, #tpu.memory_space<vmem>>) attributes {dimension_semantics = [#tpu.dimension_semantics<parallel>, #tpu.dimension_semantics<parallel>, #tpu.dimension_semantics<arbitrary>], iteration_bounds = array<i64: 8, 1, 1>, scalar_prefetch = 0 : i64, scratch_operands = 1 : i64, tpu.core_type = #tpu.core_type<tc>, window_params = [{transform_indices = @transform_0, window_bounds = array<i64: 256, 768>}, {transform_indices = @transform_1, window_bounds = array<i64: 768, 128>}, {transform_indices = @transform_2, window_bounds = array<i64: 1, 128>}, {transform_indices = @transform_3, window_bounds = array<i64: 256, 128>}]} {
    %c0_i32 = arith.constant 0 : i32
    %0 = arith.cmpi eq, %arg2, %c0_i32 : i32
    %1 = arith.extui %0 : i1 to i32
    %c0_i32_0 = arith.constant 0 : i32
    %2 = arith.cmpi ne, %1, %c0_i32_0 : i32
    scf.if %2 {
      %cst_10 = arith.constant 0.000000e+00 : f32
      %12 = vector.broadcast %cst_10 : f32 to vector<256x128xf32>
      %c0_11 = arith.constant 0 : index
      %c0_12 = arith.constant 0 : index
      %13 = vector.load %arg7[%c0_11, %c0_12] : memref<256x128xf32, #tpu.memory_space<vmem>>, vector<256x128xf32>
      tpu.vector_store %arg7[%c0_11, %c0_12], %12 {strides = array<i32>} : memref<256x128xf32, #tpu.memory_space<vmem>>, vector<256x128xf32>,
    } else {
    }
    %c0 = arith.constant 0 : index
    %c0_1 = arith.constant 0 : index
    %3 = vector.load %arg7[%c0, %c0_1] : memref<256x128xf32, #tpu.memory_space<vmem>>, vector<256x128xf32>
    %c0_2 = arith.constant 0 : index
    %c0_3 = arith.constant 0 : index
    %4 = vector.load %arg3[%c0_2, %c0_3] : memref<256x768xbf16, #tpu.memory_space<vmem>>, vector<256x768xbf16>
    %c0_4 = arith.constant 0 : index
    %c0_5 = arith.constant 0 : index
    %5 = vector.load %arg4[%c0_4, %c0_5] : memref<768x128xbf16, #tpu.memory_space<vmem>>, vector<768x128xbf16>
    %cst = arith.constant dense<0.000000e+00> : vector<256x128xf32>
    %6 = tpu.matmul %4, %5, %cst {dimension_numbers = #tpu.dot_dimension_numbers<[1], [0], [0], [1], [0, 0, 1, 1], [], []>} : vector<256x768xbf16>, vector<768x128xbf16>, vector<256x128xf32> -> vector<256x128xf32>
    %7 = arith.addf %3, %6 : vector<256x128xf32>
    %c0_6 = arith.constant 0 : index
    %c0_7 = arith.constant 0 : index
    %8 = vector.load %arg7[%c0_6, %c0_7] : memref<256x128xf32, #tpu.memory_space<vmem>>, vector<256x128xf32>
    tpu.vector_store %arg7[%c0_6, %c0_7], %7 {strides = array<i32>} : memref<256x128xf32, #tpu.memory_space<vmem>>, vector<256x128xf32>,
    %c0_i32_8 = arith.constant 0 : i32
    %9 = arith.cmpi eq, %arg2, %c0_i32_8 : i32
    %10 = arith.extui %9 : i1 to i32
    %c0_i32_9 = arith.constant 0 : i32
    %11 = arith.cmpi ne, %10, %c0_i32_9 : i32
    scf.if %11 {
      %c0_10 = arith.constant 0 : index
      %c0_11 = arith.constant 0 : index
      %12 = vector.load %arg7[%c0_10, %c0_11] : memref<256x128xf32, #tpu.memory_space<vmem>>, vector<256x128xf32>
      %c0_12 = arith.constant 0 : index
      %c0_13 = arith.constant 0 : index
      %13 = vector.load %arg5[%c0_12, %c0_13] : memref<1x128xf32, #tpu.memory_space<vmem>>, vector<1x128xf32>
      %14 = vector.broadcast %13 : vector<1x128xf32> to vector<256x128xf32>
      %15 = arith.addf %12, %14 : vector<256x128xf32>
      %16 = arith.truncf %15 : vector<256x128xf32> to vector<256x128xbf16>
      %c0_14 = arith.constant 0 : index
      %c0_15 = arith.constant 0 : index
      %17 = vector.load %arg6[%c0_14, %c0_15] : memref<256x128xbf16, #tpu.memory_space<vmem>>, vector<256x128xbf16>
      tpu.vector_store %arg6[%c0_14, %c0_15], %16 {strides = array<i32>} : memref<256x128xbf16, #tpu.memory_space<vmem>>, vector<256x128xbf16>,
    } else {
    }
    return
  }
  func.func @transform_0(%arg0: i32, %arg1: i32, %arg2: i32) -> (i32, i32) {
    %c0_i32 = arith.constant 0 : i32
    return %arg0, %arg2 : i32, i32
  }
  func.func @transform_1(%arg0: i32, %arg1: i32, %arg2: i32) -> (i32, i32) {
    %c0_i32 = arith.constant 0 : i32
    return %arg2, %arg1 : i32, i32
  }
  func.func @transform_2(%arg0: i32, %arg1: i32, %arg2: i32) -> (i32, i32) {
    %c0_i32 = arith.constant 0 : i32
    %c0_i32_0 = arith.constant 0 : i32
    return %c0_i32, %arg1 : i32, i32
  }
  func.func @transform_3(%arg0: i32, %arg1: i32, %arg2: i32) -> (i32, i32) {
    %c0_i32 = arith.constant 0 : i32
    return %arg0, %arg1 : i32, i32
  }
}

</mosaic_0001>

<bundles_post_ra>
// kernel: tpu_custom_call.1
= control target key start
LH: loop header
LB: loop body
LE: loop exit
PB: predicated region body
PF: predicated region fallthrough
CT: control target
= control target key end

     0   :  { %8 = vsyncpa [#allocation4], 0  ;;  %s3859_s0 = inlined_call_operand.hbm [shape: bf16[2048,768], index: 0, kind: input, shape index: {}]   ;;  %s3860_s1 = inlined_call_operand.hbm [shape: bf16[768,128], index: 1, kind: input, shape index: {}]   ;;  %s3861_s2 = inlined_call_operand.hbm [shape: f32[1,128], index: 2, kind: input, shape index: {}]   ;;  %s3862_s3 = inlined_call_operand.hbm [shape: bf16[2048,128], index: 3, kind: output, shape index: {}]  }
   0x1   :  { %10 = vsyncpa [#allocation4 + $0x1], 0 }
   0x2   :  { %11 = vsyncpa [#allocation7], 0 }
   0x3   :  { %12 = vsyncpa [#allocation5], 0 }
   0x4   :  { %14 = vsyncpa [#allocation5 + $0x1], 0  ;;  %s3366_s12 = smov 0   ;;  %s3368_s13 = smov 0  }
   0x5   :  { %s3370_s14 = smov 0   ;;  %s3372_s15 = smov 0  }
   0x6   :  { %s3374_s16 = smov 0   ;;  %s3376_s17 = smov 0  }
   0x7 LB: > { %s2203_s18 = sadd.s32 4294967295, %s3334_s17   ;;  %s2204_s19 = sadd.s32 4294967294, %s3334_s17   ;;  %s3334_s17 = sphi %s3376_s17, %s20_s17   ;;  %s3330_s16 = sphi %s3374_s16, %s3884_s16   ;;  %s3326_s15 = sphi %s3372_s15, %s3883_s15   ;;  %s3322_s14 = sphi %s3370_s14, %s3882_s14   ;;  %s3318_s13 = sphi %s3368_s13, %s3881_s13   ;;  %s3314_s12 = sphi %s3366_s12, %s3880_s12  }
   0x8   : > { %p61_p0 = scmp.ne.s32.totalorder %s3318_s13, %s3314_s12  ;;  %p3400_p1 = scmp.eq.s32.totalorder %s2203_s18, 0 }
   0x9   : > { %p3404_p2 = scmp.eq.s32.totalorder %s2203_s18, 7  ;;  %p147_p3 = scmp.eq.s32.totalorder %s2204_s19, 7 }
   0xa   : > { %s3867_s20 = scalar_select %p3400_p1, 1, 0 }
   0xb   : > { %s3868_s21 = scalar_select %p3404_p2, 1, 0 }
   0xc   : > { %p3410_p4 = por %p3400_p1, %p61_p0  ;;  %p2205_p5 = scmp.ge.s32.totalorder %s3334_s17, 1 }
   0xd   : > { %p3415_p6 = por %p147_p3, %p61_p0  ;;  %p154_p7 = scmp.lt.s32.totalorder %s3334_s17, 9 }
   0xe   : > { %s3869_s22 = scalar_select %p3410_p4, 1, 0 }
   0xf   : > { %s3870_s23 = scalar_select %p3415_p6, 1, 0 }
  0x10   : > { %p3420_p8 = pnand %p2205_p5, %p154_p7  ;;  %s3336_s25 = smov [#allocation6]  }
  0x11   : > { %s170_s26 = sshll.u32 %s3336_s25, 4  ;;  %s3337_s28 = smov [#allocation8]   ;;  %s171_s26 = int_to_ptr.vmem [resolvable:$true] %s170_s26 }
  0x12   : > { %s3871_s24 = scalar_select %p3420_p8, 1, 0 }
  0x13   : > { %p2893_p9 = pneg %p3420_p8  ;;  %s186_s29 = sshll.u32 %s3337_s28, 4  ;;  %s3432_s29 = int_to_ptr.vmem [resolvable:$true] %s186_s29 }
  0x14   : > { %s3162_s5 = scalar_lea.hbm %s3860_s1, 6144 }
  0x15   : > { %p3428_p10 = pnand %p2893_p9, %p3400_p1  ;;  %p3163_p11 = scmp.ne.s32.totalorder %s3860_s1, %s3162_s5 }
  0x16   : > { %p3169_p3 = scmp.lt.u32.totalorder %s3162_s5, %s3860_s1 }
  0x17   : > { %p3164_p12 = pneg %p3428_p10 }
  0x19   : > { %p3165_p13 = pnand %p3164_p12, %p3163_p11 }
  0x1b   : > { %p3166_p0 = pneg %p3165_p13 }
  0x1d   : > { %p3171_p5 = pnand %p3169_p3, %p3166_p0 }
  0x1f   : > { %3174 = shalt.err (!%p3171_p5)
}
  0x20   : > { %s3175_s10 = scalar_lea.vmem %s171_s26, 6144  ;;  %p3183_p1 = scmp.lt.s32.totalorder %s171_s26, %s171_s26 }
  0x21   : > { %p3176_p7 = scmp.ne.s32.totalorder %s171_s26, %s3175_s10  ;;  %p3184_p4 = scmp.lt.s32.totalorder %s3175_s10, %s3175_s10 }
  0x23   : > { %p3178_p9 = pnand %p3176_p7, %p3164_p12  ;;  %p3185_p8 = por %p3184_p4, %p3183_p1 }
  0x25   : > { %p3179_p6 = pneg %p3178_p9 }
  0x27   : > { %p3186_p2 = pnand %p3185_p8, %p3179_p6 }
  0x29   : > { %3189 = shalt.err (!%p3186_p2)
}
  0x2a   : > { %s3338_s11 = smov 64   ;;  %s3339_s18 = smov 4  }
  0x2b   : > { %2896 = dma.hbm_to_vmem [thread:$0]  (!%p3428_p10), %s3860_s1, 6144, %s171_s26, [#allocation7], %s3338_s11, %s3338_s11, %s3339_s18  }
  0x2c   : > { %s3190_s4 = scalar_lea.hbm %s3861_s2, 16 }
  0x2d   : > { %p3191_p11 = scmp.ne.s32.totalorder %s3861_s2, %s3190_s4  ;;  %p3197_p4 = scmp.lt.u32.totalorder %s3190_s4, %s3861_s2 }
  0x2f   : > { %p3193_p1 = pnand %p3191_p11, %p3164_p12 }
  0x31   : > { %p3194_p2 = pneg %p3193_p1 }
  0x33   : > { %p3199_p6 = pnand %p3197_p4, %p3194_p2 }
  0x35   : > { %3202 = shalt.err (!%p3199_p6)
}
  0x36   : > { %s3203_s26 = scalar_lea.vmem %s3432_s29, 16  ;;  %s3210_s9 = scalar_lea.vmem %s3432_s29, 32 }
  0x37   : > { %p3204_p8 = scmp.ne.s32.totalorder %s3432_s29, %s3203_s26  ;;  %p3211_p3 = scmp.lt.s32.totalorder %s3432_s29, %s3432_s29 }
  0x38   : > { %p3212_p5 = scmp.lt.s32.totalorder %s3210_s9, %s3203_s26 }
  0x39   : > { %p3206_p13 = pnand %p3204_p8, %p3164_p12 }
  0x3a   : > { %p3213_p7 = por %p3212_p5, %p3211_p3 }
  0x3b   : > { %p3207_p0 = pneg %p3206_p13 }
  0x3d   : > { %p3214_p9 = pnand %p3213_p7, %p3207_p0 }
  0x3f   : > { %3217 = shalt.err (!%p3214_p9)
}
  0x40   : > { %2899 = dma.hbm_to_vmem [thread:$0]  (!%p3428_p10), %s3861_s2, 16, %s3432_s29, [#allocation7]  }
  0x41   : > { %s39_s18 = sadd.s32 1, %s3330_s16  ;;  %s48_s19 = sadd.s32 1, %s3322_s14 }
  0x42   : > { %p41_p12 = scmp.ge.s32.totalorder %s39_s18, 8  ;;  %p55_p11 = scmp.ne.s32.totalorder %s3322_s14, %s3318_s13 }
  0x43   : > { %p56_p1 = scmp.eq.s32.totalorder %s3334_s17, 0  ;;  %p2910_p2 = scmp.lt.s32.totalorder %s3334_s17, 8 }
  0x44   : > { %s3886_s18 = smov (%p41_p12, %s39_s18), 0  ;;  %p3873_p6 = scmp.ne.s32.totalorder %s3868_s21, 0 }
  0x45   : > { %p57_p4 = por %p56_p1, %p55_p11  ;;  %s43_s25 = ssub.s32 %s3330_s16, %s3886_s18 }
  0x46   : > { %p3492_p8 = por %p3873_p6, %p55_p11  ;;  %s197_s28 = sand.u32 1, %s3322_s14  }
  0x47   : > { %p46_p13 = scmp.eq.s32.totalorder %s43_s25, 0  ;;  %s2878_s29 = smul.u32 768, %s197_s28 }
  0x48   : > { %p3499_p10 = pnand %p2910_p2, %p57_p4  ;;  %s2879_s5 = smul.u32 12288, %s3330_s16 }
  0x49   : > { %s3504_s4 = scalar_select %p46_p13, %s3322_s14, %s48_s19  }
  0x4a   : > { %s201_s6 = scalar_lea.vmem [#allocation3], %s2878_s29  ;;  %s3510_s26 = scalar_lea.hbm %s3859_s0, %s2879_s5 }
  0x4b   : > { %s211_s7 = sshll.u32 %s201_s6, 4  ;;  %s3514_s9 = scalar_lea.sflag [#allocation4], %s197_s28  ;;  %s3512_s7 = int_to_ptr.vmem [resolvable:$true] %s211_s7 }
  0x4c   : > { %s3218_s10 = scalar_lea.hbm %s3510_s26, 12288  ;;  %p3220_p3 = pneg %p3499_p10 }
  0x4d   : > { %p3219_p0 = scmp.ne.s32.totalorder %s3510_s26, %s3218_s10  ;;  %s3223_s25 = scalar_lea.hbm %s3859_s0, 98304 }
  0x4e   : > { %p3224_p9 = scmp.lt.u32.totalorder %s3510_s26, %s3859_s0  ;;  %p3225_p12 = scmp.lt.u32.totalorder %s3223_s25, %s3218_s10 }
  0x4f   : > { %p3221_p5 = pnand %p3220_p3, %p3219_p0  ;;  %p3227_p1 = scmp.lt.u32.totalorder %s3218_s10, %s3510_s26 }
  0x50   : > { %p3226_p11 = por %p3225_p12, %p3224_p9 }
  0x51   : > { %p3222_p7 = pneg %p3221_p5 }
  0x52   : > { %p3228_p2 = por %p3227_p1, %p3226_p11 }
  0x54   : > { %p3229_p4 = pnand %p3228_p2, %p3222_p7 }
  0x56   : > { %3232 = shalt.err (!%p3229_p4)
}
  0x57   : > { %s3233_s28 = scalar_lea.vmem %s3512_s7, 12288  ;;  %s3340_s6 = smov [#allocation3]  }
  0x58   : > { %p3234_p6 = scmp.ne.s32.totalorder %s3512_s7, %s3233_s28  ;;  %s3238_s21 = sshll.u32 %s3340_s6, 4  ;;  %s3239_s21 = int_to_ptr.vmem [resolvable:$false] %s3238_s21 }
  0x59   : > { %s3240_s8 = scalar_lea.vmem %s3239_s21, 24576  ;;  %p3241_p5 = scmp.lt.s32.totalorder %s3512_s7, %s3239_s21 }
  0x5a   : > { %p3236_p13 = pnand %p3234_p6, %p3220_p3  ;;  %p3242_p9 = scmp.lt.s32.totalorder %s3240_s8, %s3233_s28 }
  0x5c   : > { %p3237_p0 = pneg %p3236_p13  ;;  %p3243_p12 = por %p3242_p9, %p3241_p5 }
  0x5e   : > { %p3244_p11 = pnand %p3243_p12, %p3237_p0 }
  0x60   : > { %3247 = shalt.err (!%p3244_p11)
}
  0x61   : > { %s3341_s10 = smov 384   ;;  %s3342_s11 = smov 24  }
  0x62   : > { %2903 = dma.hbm_to_vmem [thread:$0]  (!%p3499_p10), %s3510_s26, 12288, %s3512_s7, %s3514_s9, %s3341_s10, %s3341_s10, %s3342_s11  }
  0x63   : > { %p3876_p3 = scmp.ne.s32.totalorder %s3871_s24, 0 }
  0x64   : > { %s3545_s19 = sand.u32 (!%p3876_p3), 1, %s3318_s13   ;;  %p3877_p7 = scmp.ne.s32.totalorder (!%p3876_p3), %s3869_s22, 0 }
  0x65   : > { %223 = sbr.rel (%p3876_p3) target bundleno = 569 (0x239), region = 32  ;;  %s226_s29 = scalar_lea.sflag (!%p3876_p3), [#allocation4], %s3545_s19 }
  0x66   : > { %s2880_s25 = smul.u32 (!%p3876_p3), 768, %s3545_s19 }
  0x68   : > { %s3549_s5 = scalar_lea.vmem (!%p3876_p3), [#allocation3], %s2880_s25 }
  0x6c   : > { %3301 = dma.done.wait (%p3877_p7), %s226_s29, 12288  }
  0x6d   : > { %3303 = vsyncadd (%p3877_p7), %s226_s29, 4294955008  ;;  %p3878_p10 = scmp.ne.s32.totalorder %s3867_s20, 0 }
  0x6f   : > { %3305 = dma.done.wait (%p3878_p10), [#allocation7], 6160  }
  0x70   : > { %3307 = vsyncadd (%p3878_p10), [#allocation7], 4294961136  ;;  %v2970_v0 = vld [vmem:[#allocation6 + $0x40] sm:$0xff]   ;;  %v2972_v2 = vld [vmem:[#allocation6 + $0x48] sm:$0xff]   ;;  %s2215_s20 = sshll.u32 %s3545_s19, 7  ;;  %s2430_s24 = sshll.u32 %s3326_s15, 11 }
  0x71   : > { %v2971_v1 = vld [vmem:[#allocation6] sm:$0xff]   ;;  %2526 = vmatprep.subr.bf16.mxu0 %v2970_v0  ;;  %2862 = vmatprep.subr.bf16.mxu1 %v2970_v0  ;;  %v2973_v3 = vld [vmem:[#allocation6 + $0x8] sm:$0xff]   ;;  %v2974_v4 = vld [vmem:[#allocation6 + $0x50] sm:$0xff]   ;;  %s3727_s22 = scalar_lea.vmem [#allocation9], %s2215_s20  ;;  %s3808_s9 = scalar_lea.hbm %s3862_s3, %s2430_s24 }
  0x72   : > { %2527 = vmatpush3.bf16.msra.mxu0 %v2971_v1  ;;  %2870 = vmatpush3.bf16.msra.mxu1 %v2971_v1  ;;  %v2975_v5 = vld [vmem:[#allocation6 + $0x10] sm:$0xff]   ;;  %v2976_v6 = vld [vmem:[#allocation6 + $0x58] sm:$0xff]   ;;  %v2978_v8 = vld [vmem:[#allocation6 + $0x60] sm:$0xff]   ;;  %s2089_s30 = sshll.u32 %s3727_s22, 4  ;;  %s2075_s28 = scalar_lea.sflag [#allocation5], %s3545_s19  ;;  %s3810_s30 = int_to_ptr.vmem [resolvable:$true] %s2089_s30 }
  0x73   : > { %2528 = vmatprep.subr.bf16.mxu0 %v2972_v2  ;;  %2863 = vmatprep.subr.bf16.mxu1 %v2972_v2  ;;  %v2977_v7 = vld [vmem:[#allocation6 + $0x18] sm:$0xff]   ;;  %v2979_v9 = vld [vmem:[#allocation6 + $0x20] sm:$0xff]   ;;  %v2980_v10 = vld [vmem:[#allocation6 + $0x68] sm:$0xff]   ;;  %s3248_s6 = scalar_lea.vmem %s3810_s30, 2048  ;;  %s3343_s15 = smov [#allocation9]  }
  0x74   : > { %v2988_v11 = vld [vmem:[%s3549_s5 + $0x4] ss:$24 sps:$4 sm:$0xff]   ;;  %v2981_v13 = vld [vmem:[#allocation6 + $0x28] sm:$0xff]   ;;  %v2982_v14 = vld [vmem:[#allocation6 + $0x70] sm:$0xff]   ;;  %p3249_p1 = scmp.ne.s32.totalorder %s3810_s30, %s3248_s6  ;;  %s3252_s21 = sshll.u32 %s3343_s15, 4  ;;  %s3253_s21 = int_to_ptr.vmem [resolvable:$false] %s3252_s21 }
  0x75   : > { %v2991_v12 = vld [vmem:[%s3549_s5 + $0x184] ss:$24 sps:$4 sm:$0xff]   ;;  %1325 = vmatprep.mubr.bf16.mxu0 %v2988_v11  ;;  %v2983_v15 = vld [vmem:[#allocation6 + $0x30] sm:$0xff]   ;;  %v2986_v19 = vld [vmem:[%s3549_s5] ss:$24 sps:$4 sm:$0xff]   ;;  %s3254_s8 = scalar_lea.vmem %s3253_s21, 4096  ;;  %p3255_p6 = scmp.lt.s32.totalorder %s3810_s30, %s3253_s21 }
  0x76   : > { %2529 = vmatpush3.bf16.msra.mxu0 %v2973_v3  ;;  %2871 = vmatpush3.bf16.msra.mxu1 %v2973_v3  ;;  %v2984_v16 = vld [vmem:[#allocation6 + $0x78] sm:$0xff]   ;;  %v2992_v18 = vld [vmem:[#allocation6 + $0xc0] sm:$0xff]   ;;  %v2996_v24 = vld [vmem:[%s3549_s5 + $0x34] ss:$24 sps:$4 sm:$0xff]   ;;  %p3250_p2 = pnand %p3249_p1, %p3492_p8  ;;  %p3256_p13 = scmp.lt.s32.totalorder %s3254_s8, %s3248_s6 }
  0x77   : > { %2530 = vmatprep.subr.bf16.mxu0 %v2974_v4  ;;  %2864 = vmatprep.subr.bf16.mxu1 %v2974_v4  ;;  %v2985_v17 = vld [vmem:[#allocation6 + $0x38] sm:$0xff]   ;;  %v2994_v20 = vld [vmem:[#allocation6 + $0x140] sm:$0xff]   ;;  %v2998_v25 = vld [vmem:[%s3549_s5 + $0x1b4] ss:$24 sps:$4 sm:$0xff]  }
  0x78   : > { %1389 = vmatprep.mubr.bf16.mxu1 %v2991_v12  ;;  %v2989_v21 = vld [vmem:[%s3549_s5 + $0x180] ss:$24 sps:$4 sm:$0xff]   ;;  %v3002_v26 = vld [vmem:[#allocation6 + $0xc8] sm:$0xff]   ;;  %v3012_v30 = vld [vmem:[#allocation6 + $0xd0] sm:$0xff]   ;;  %p3251_p4 = pneg %p3250_p2  ;;  %p3257_p0 = por %p3256_p13, %p3255_p6 }
  0x79   : > { %v2993_v22 = vld [vmem:[#allocation6 + $0x80] sm:$0xff]   ;;  %v3003_v27 = vld [vmem:[#allocation6 + $0x88] sm:$0xff]   ;;  %v3014_v33 = vld [vmem:[#allocation6 + $0x150] sm:$0xff]  }
  0x7a   : > { %2531 = vmatpush3.bf16.msra.mxu0 %v2975_v5  ;;  %2872 = vmatpush3.bf16.msra.mxu1 %v2975_v5  ;;  %v2995_v23 = vld [vmem:[#allocation6 + $0x100] sm:$0xff]   ;;  %v3004_v28 = vld [vmem:[#allocation6 + $0x148] sm:$0xff]   ;;  %v3013_v36 = vld [vmem:[#allocation6 + $0x90] sm:$0xff]   ;;  %p3258_p5 = pnand %p3257_p0, %p3251_p4 }
  0x7b   : > { %2532 = vmatprep.subr.bf16.mxu0 %v2976_v6  ;;  %2865 = vmatprep.subr.bf16.mxu1 %v2976_v6  ;;  %v3005_v29 = vld [vmem:[#allocation6 + $0x108] sm:$0xff]   ;;  %v3006_v34 = vld [vmem:[%s3549_s5 + $0x64] ss:$24 sps:$4 sm:$0xff]   ;;  %v3015_v37 = vld [vmem:[#allocation6 + $0x110] sm:$0xff]  }
  0x7c   : > { %v3000_v31 = vld [vmem:[%s3549_s5 + $0x30] ss:$24 sps:$4 sm:$0xff]   ;;  %v3008_v35 = vld [vmem:[%s3549_s5 + $0x1e4] ss:$24 sps:$4 sm:$0xff]   ;;  %v3010_v40 = vld [vmem:[%s3549_s5 + $0x60] ss:$24 sps:$4 sm:$0xff]  }
  0x7d   : > { %v3001_v32 = vld [vmem:[%s3549_s5 + $0x1b0] ss:$24 sps:$4 sm:$0xff]   ;;  %v3022_v38 = vld [vmem:[#allocation6 + $0xd8] sm:$0xff]   ;;  %v3016_v44 = vld [vmem:[%s3549_s5 + $0x94] ss:$24 sps:$4 sm:$0xff]  }
  0x7e   : > { %2533 = vmatpush3.bf16.msra.mxu0 %v2977_v7  ;;  %2873 = vmatpush3.bf16.msra.mxu1 %v2977_v7  ;;  %v3024_v39 = vld [vmem:[#allocation6 + $0x158] sm:$0xff]   ;;  %v3018_v45 = vld [vmem:[%s3549_s5 + $0x214] ss:$24 sps:$4 sm:$0xff]   ;;  %v3032_v46 = vld [vmem:[#allocation6 + $0xe0] sm:$0xff]  }
  0x7f   : > { %2534 = vmatprep.subr.bf16.mxu0 %v2978_v8  ;;  %2866 = vmatprep.subr.bf16.mxu1 %v2978_v8  ;;  %v3011_v41 = vld [vmem:[%s3549_s5 + $0x1e0] ss:$24 sps:$4 sm:$0xff]   ;;  %v3020_v50 = vld [vmem:[%s3549_s5 + $0x90] ss:$24 sps:$4 sm:$0xff]   ;;  %v3026_v53 = vld [vmem:[%s3549_s5 + $0xc4] ss:$24 sps:$4 sm:$0xff]  }
  0x80   : > { %v3023_v42 = vld [vmem:[#allocation6 + $0x98] sm:$0xff]   ;;  %v3033_v47 = vld [vmem:[#allocation6 + $0xa0] sm:$0xff]   ;;  %v3021_v51 = vld [vmem:[%s3549_s5 + $0x210] ss:$24 sps:$4 sm:$0xff]  }
  0x81   : > { %v3025_v43 = vld [vmem:[#allocation6 + $0x118] sm:$0xff]   ;;  %v3034_v48 = vld [vmem:[#allocation6 + $0x160] sm:$0xff]   ;;  %v3042_v52 = vld [vmem:[#allocation6 + $0xe8] sm:$0xff]  }
  0x82   : > { %2535 = vmatpush3.bf16.msra.mxu0 %v2979_v9  ;;  %2874 = vmatpush3.bf16.msra.mxu1 %v2979_v9  ;;  %v3035_v49 = vld [vmem:[#allocation6 + $0x120] sm:$0xff]   ;;  %v3043_v55 = vld [vmem:[#allocation6 + $0xa8] sm:$0xff]   ;;  %v3052_v58 = vld [vmem:[#allocation6 + $0xf0] sm:$0xff]  }
  0x83   : > { %2536 = vmatprep.subr.bf16.mxu0 %v2980_v10  ;;  %2867 = vmatprep.subr.bf16.mxu1 %v2980_v10  ;;  %v3028_v54 = vld [vmem:[%s3549_s5 + $0x244] ss:$24 sps:$4 sm:$0xff]   ;;  %v3044_v56 = vld [vmem:[#allocation6 + $0x168] sm:$0xff]   ;;  %v3030_v59 = vld [vmem:[%s3549_s5 + $0xc0] ss:$24 sps:$4 sm:$0xff]  }
  0x84   : > { %v3045_v57 = vld [vmem:[#allocation6 + $0x128] sm:$0xff]   ;;  %v3031_v60 = vld [vmem:[%s3549_s5 + $0x240] ss:$24 sps:$4 sm:$0xff]   ;;  %v3053_v61 = vld [vmem:[#allocation6 + $0xb0] sm:$0xff]  }
  0x85   : > { %v3036_v62 = vld [vmem:[%s3549_s5 + $0xf4] ss:$24 sps:$4 sm:$0xff]   ;;  %v3062_v2 = vld [vmem:[#allocation6 + $0xf8] sm:$0xff]   ;;  %v3040_v6 = vld [vmem:[%s3549_s5 + $0xf0] ss:$24 sps:$4 sm:$0xff]  }
  0x86   : > { %2537 = vmatpush3.bf16.msra.mxu0 %v2981_v13  ;;  %2875 = vmatpush3.bf16.msra.mxu1 %v2981_v13  ;;  %v3054_v63 = vld [vmem:[#allocation6 + $0x170] sm:$0xff]   ;;  %v3063_v3 = vld [vmem:[#allocation6 + $0xb8] sm:$0xff]  }
  0x87   : > { %2538 = vmatprep.subr.bf16.mxu0 %v2982_v14  ;;  %2868 = vmatprep.subr.bf16.mxu1 %v2982_v14  ;;  %v3055_v0 = vld [vmem:[#allocation6 + $0x130] sm:$0xff]   ;;  %v3064_v4 = vld [vmem:[#allocation6 + $0x178] sm:$0xff]  }
  0x88   : > { %v3038_v1 = vld [vmem:[%s3549_s5 + $0x274] ss:$24 sps:$4 sm:$0xff]   ;;  %v3065_v5 = vld [vmem:[#allocation6 + $0x138] sm:$0xff]   ;;  %v3041_v7 = vld [vmem:[%s3549_s5 + $0x270] ss:$24 sps:$4 sm:$0xff]  }
  0x89   : > { %v3046_v8 = vld [vmem:[%s3549_s5 + $0x124] ss:$24 sps:$4 sm:$0xff]   ;;  %v3050_v10 = vld [vmem:[%s3549_s5 + $0x120] ss:$24 sps:$4 sm:$0xff]   ;;  %v3056_v12 = vld [vmem:[%s3549_s5 + $0x154] ss:$24 sps:$4 sm:$0xff]  }
  0x8a   : > { %2539 = vmatpush3.bf16.msra.mxu0 %v2983_v15  ;;  %2876 = vmatpush3.bf16.msra.mxu1 %v2983_v15  ;;  %v3048_v9 = vld [vmem:[%s3549_s5 + $0x2a4] ss:$24 sps:$4 sm:$0xff]   ;;  %v3051_v11 = vld [vmem:[%s3549_s5 + $0x2a0] ss:$24 sps:$4 sm:$0xff]   ;;  %v3058_v13 = vld [vmem:[%s3549_s5 + $0x2d4] ss:$24 sps:$4 sm:$0xff]  }
  0x8b   : > { %2540 = vmatprep.subr.bf16.mxu0 %v2984_v16  ;;  %2869 = vmatprep.subr.bf16.mxu1 %v2984_v16  ;;  %v3060_v14 = vld [vmem:[%s3549_s5 + $0x150] ss:$24 sps:$4 sm:$0xff]   ;;  %v3068_v16 = vld [vmem:[%s3549_s5 + $0xc] ss:$24 sps:$4 sm:$0xff]  }
  0x8c   : > { %v3061_v15 = vld [vmem:[%s3549_s5 + $0x2d0] ss:$24 sps:$4 sm:$0xff]  }
  0x8e   : > { %2541 = vmatpush3.bf16.msra.mxu0 %v2985_v17  ;;  %2877 = vmatpush3.bf16.msra.mxu1 %v2985_v17  ;;  %v3071_v17 = vld [vmem:[%s3549_s5 + $0x14] ss:$24 sps:$4 sm:$0xff]  }
  0x8f   : > { %2638 = vmatprep.subr.bf16.mxu1 %v2992_v18  ;;  %2750 = vmatprep.subr.bf16.mxu0 %v2994_v20  ;;  %v3066_v18 = vld [vmem:[%s3549_s5 + $0x8] ss:$24 sps:$4 sm:$0xff]   ;;  %v3072_v20 = vld [vmem:[%s3549_s5 + $0x3c] ss:$24 sps:$4 sm:$0xff]  }
  0x91   : > { %1326 = vmatmul.mubr.bf16.vlgmr.msra.gmra.mrb[0].mxu0 %v2986_v19  ;;  %1390 = vmatmul.mubr.bf16.vlgmr.msra.gmra.mrb[0].mxu1 %v2989_v21  ;;  %v3069_v19 = vld [vmem:[%s3549_s5 + $0x10] ss:$24 sps:$4 sm:$0xff]   ;;  %v3074_v21 = vld [vmem:[%s3549_s5 + $0x44] ss:$24 sps:$4 sm:$0xff]  }
  0x92   : > { %2639 = vmatpush3.bf16.msra.mxu1 %v2993_v22  ;;  %2751 = vmatpush3.bf16.msra.mxu0 %v2995_v23  ;;  %v3076_v22 = vld [vmem:[%s3549_s5 + $0x38] ss:$24 sps:$4 sm:$0xff]  }
  0x93   : > { %1333 = vmatprep.mubr.bf16.mxu0 %v2996_v24  ;;  %1397 = vmatprep.mubr.bf16.mxu1 %v2998_v25  ;;  %v3077_v23 = vld [vmem:[%s3549_s5 + $0x40] ss:$24 sps:$4 sm:$0xff]   ;;  %v3078_v24 = vld [vmem:[%s3549_s5 + $0x6c] ss:$24 sps:$4 sm:$0xff]  }
  0x94   : > { %2640 = vmatprep.subr.bf16.mxu1 %v3002_v26  ;;  %2752 = vmatprep.subr.bf16.mxu0 %v3004_v28  ;;  %v3080_v25 = vld [vmem:[%s3549_s5 + $0x74] ss:$24 sps:$4 sm:$0xff]   ;;  %v3082_v26 = vld [vmem:[%s3549_s5 + $0x68] ss:$24 sps:$4 sm:$0xff]  }
  0x95   : > { %v3084_v28 = vld [vmem:[%s3549_s5 + $0x9c] ss:$24 sps:$4 sm:$0xff]  }
  0x96   : > { %2641 = vmatpush3.bf16.msra.mxu1 %v3003_v27  ;;  %2753 = vmatpush3.bf16.msra.mxu0 %v3005_v29  ;;  %v3083_v27 = vld [vmem:[%s3549_s5 + $0x70] ss:$24 sps:$4 sm:$0xff]   ;;  %v3086_v29 = vld [vmem:[%s3549_s5 + $0xa4] ss:$24 sps:$4 sm:$0xff]  }
  0x97   : > { %2642 = vmatprep.subr.bf16.mxu1 %v3012_v30  ;;  %2754 = vmatprep.subr.bf16.mxu0 %v3014_v33  ;;  %v3088_v30 = vld [vmem:[%s3549_s5 + $0x98] ss:$24 sps:$4 sm:$0xff]   ;;  %v3092_v33 = vld [vmem:[%s3549_s5 + $0xd4] ss:$24 sps:$4 sm:$0xff]  }
  0x99   : > { %1334 = vmatmul.mubr.bf16.gmra.mrb[4].mxu0 %v3000_v31  ;;  %1398 = vmatmul.mubr.bf16.gmra.mrb[4].mxu1 %v3001_v32  ;;  %v3089_v31 = vld [vmem:[%s3549_s5 + $0xa0] ss:$24 sps:$4 sm:$0xff]   ;;  %v3090_v32 = vld [vmem:[%s3549_s5 + $0xcc] ss:$24 sps:$4 sm:$0xff]  }
  0x9a   : > { %1341 = vmatprep.mubr.bf16.mxu0 %v3006_v34  ;;  %1405 = vmatprep.mubr.bf16.mxu1 %v3008_v35  ;;  %v3094_v34 = vld [vmem:[%s3549_s5 + $0xc8] ss:$24 sps:$4 sm:$0xff]  }
  0x9b   : > { %2643 = vmatpush3.bf16.msra.mxu1 %v3013_v36  ;;  %2755 = vmatpush3.bf16.msra.mxu0 %v3015_v37  ;;  %v3095_v35 = vld [vmem:[%s3549_s5 + $0xd0] ss:$24 sps:$4 sm:$0xff]   ;;  %v3096_v36 = vld [vmem:[%s3549_s5 + $0xfc] ss:$24 sps:$4 sm:$0xff]  }
  0x9c   : > { %2644 = vmatprep.subr.bf16.mxu1 %v3022_v38  ;;  %2756 = vmatprep.subr.bf16.mxu0 %v3024_v39  ;;  %v3098_v37 = vld [vmem:[%s3549_s5 + $0x104] ss:$24 sps:$4 sm:$0xff]   ;;  %v3100_v38 = vld [vmem:[%s3549_s5 + $0xf8] ss:$24 sps:$4 sm:$0xff]  }
  0x9d   : > { %v3101_v39 = vld [vmem:[%s3549_s5 + $0x100] ss:$24 sps:$4 sm:$0xff]  }
  0x9f   : > { %2645 = vmatpush3.bf16.msra.mxu1 %v3023_v42  ;;  %2757 = vmatpush3.bf16.msra.mxu0 %v3025_v43  ;;  %v3106_v42 = vld [vmem:[%s3549_s5 + $0x128] ss:$24 sps:$4 sm:$0xff]  }
  0xa0   : > { %2646 = vmatprep.subr.bf16.mxu1 %v3032_v46  ;;  %2758 = vmatprep.subr.bf16.mxu0 %v3034_v48  ;;  %v3107_v43 = vld [vmem:[%s3549_s5 + $0x130] ss:$24 sps:$4 sm:$0xff]   ;;  %v3114_v48 = vld [vmem:[%s3549_s5 + $0x18c] ss:$24 sps:$4 sm:$0xff]  }
  0xa1   : > { %1342 = vmatmul.mubr.bf16.gmra.mrb[8].mxu0 %v3010_v40  ;;  %1406 = vmatmul.mubr.bf16.gmra.mrb[8].mxu1 %v3011_v41  ;;  %v3102_v40 = vld [vmem:[%s3549_s5 + $0x12c] ss:$24 sps:$4 sm:$0xff]   ;;  %v3112_v46 = vld [vmem:[%s3549_s5 + $0x158] ss:$24 sps:$4 sm:$0xff]  }
  0xa2   : > { %1349 = vmatprep.mubr.bf16.mxu0 %v3016_v44  ;;  %1413 = vmatprep.mubr.bf16.mxu1 %v3018_v45  ;;  %v3104_v41 = vld [vmem:[%s3549_s5 + $0x134] ss:$24 sps:$4 sm:$0xff]   ;;  %v3110_v45 = vld [vmem:[%s3549_s5 + $0x164] ss:$24 sps:$4 sm:$0xff]  }
  0xa3   : > { %2647 = vmatpush3.bf16.msra.mxu1 %v3033_v47  ;;  %2759 = vmatpush3.bf16.msra.mxu0 %v3035_v49  ;;  %v3108_v44 = vld [vmem:[%s3549_s5 + $0x15c] ss:$24 sps:$4 sm:$0xff]   ;;  %v3113_v47 = vld [vmem:[%s3549_s5 + $0x160] ss:$24 sps:$4 sm:$0xff]  }
  0xa4   : > { %2648 = vmatprep.subr.bf16.mxu1 %v3042_v52  ;;  %2760 = vmatprep.subr.bf16.mxu0 %v3044_v56  ;;  %v3116_v49 = vld [vmem:[%s3549_s5 + $0x194] ss:$24 sps:$4 sm:$0xff]  }
  0xa5   : > { %v3120_v52 = vld [vmem:[%s3549_s5 + $0x1bc] ss:$24 sps:$4 sm:$0xff]   ;;  %v3126_v56 = vld [vmem:[%s3549_s5 + $0x1ec] ss:$24 sps:$4 sm:$0xff]  }
  0xa7   : > { %2649 = vmatpush3.bf16.msra.mxu1 %v3043_v55  ;;  %2761 = vmatpush3.bf16.msra.mxu0 %v3045_v57  ;;  %v3125_v55 = vld [vmem:[%s3549_s5 + $0x1c0] ss:$24 sps:$4 sm:$0xff]   ;;  %v3128_v57 = vld [vmem:[%s3549_s5 + $0x1f4] ss:$24 sps:$4 sm:$0xff]  }
  0xa8   : > { %2650 = vmatprep.subr.bf16.mxu1 %v3052_v58  ;;  %2762 = vmatprep.subr.bf16.mxu0 %v3054_v63  ;;  %v3130_v58 = vld [vmem:[%s3549_s5 + $0x1e8] ss:$24 sps:$4 sm:$0xff]  }
  0xa9   : > { %1350 = vmatmul.mubr.bf16.gmra.mrb[12].mxu0 %v3020_v50  ;;  %1414 = vmatmul.mubr.bf16.gmra.mrb[12].mxu1 %v3021_v51  ;;  %v3118_v50 = vld [vmem:[%s3549_s5 + $0x188] ss:$24 sps:$4 sm:$0xff]  }
  0xaa   : > { %1357 = vmatprep.mubr.bf16.mxu0 %v3026_v53  ;;  %1421 = vmatprep.mubr.bf16.mxu1 %v3028_v54  ;;  %v3119_v51 = vld [vmem:[%s3549_s5 + $0x190] ss:$24 sps:$4 sm:$0xff]   ;;  %v3122_v53 = vld [vmem:[%s3549_s5 + $0x1c4] ss:$24 sps:$4 sm:$0xff]   ;;  %v3137_v63 = vld [vmem:[%s3549_s5 + $0x220] ss:$24 sps:$4 sm:$0xff]  }
  0xab   : > { %2651 = vmatpush3.bf16.msra.mxu1 %v3053_v61  ;;  %2763 = vmatpush3.bf16.msra.mxu0 %v3055_v0  ;;  %v3124_v54 = vld [vmem:[%s3549_s5 + $0x1b8] ss:$24 sps:$4 sm:$0xff]   ;;  %v3134_v61 = vld [vmem:[%s3549_s5 + $0x224] ss:$24 sps:$4 sm:$0xff]  }
  0xac   : > { %2652 = vmatprep.subr.bf16.mxu1 %v3062_v2  ;;  %2764 = vmatprep.subr.bf16.mxu0 %v3064_v4  ;;  %v3138_v0 = vld [vmem:[%s3549_s5 + $0x24c] ss:$24 sps:$4 sm:$0xff]   ;;  %v3142_v2 = vld [vmem:[%s3549_s5 + $0x248] ss:$24 sps:$4 sm:$0xff]   ;;  %v3144_v4 = vld [vmem:[%s3549_s5 + $0x27c] ss:$24 sps:$4 sm:$0xff]  }
  0xaf   : > { %2653 = vmatpush3.bf16.msra.mxu1 %v3063_v3  ;;  %2765 = vmatpush3.bf16.msra.mxu0 %v3065_v5  ;;  %v3143_v3 = vld [vmem:[%s3549_s5 + $0x250] ss:$24 sps:$4 sm:$0xff]   ;;  %v3146_v5 = vld [vmem:[%s3549_s5 + $0x284] ss:$24 sps:$4 sm:$0xff]  }
  0xb1   : > { %1358 = vmatmul.mubr.bf16.gmra.mrb[16].mxu0 %v3030_v59  ;;  %1422 = vmatmul.mubr.bf16.gmra.mrb[16].mxu1 %v3031_v60  ;;  %v3131_v59 = vld [vmem:[%s3549_s5 + $0x1f0] ss:$24 sps:$4 sm:$0xff]   ;;  %v3132_v60 = vld [vmem:[%s3549_s5 + $0x21c] ss:$24 sps:$4 sm:$0xff]  }
  0xb2   : > { %1365 = vmatprep.mubr.bf16.mxu0 %v3036_v62  ;;  %1429 = vmatprep.mubr.bf16.mxu1 %v3038_v1  ;;  %v3136_v62 = vld [vmem:[%s3549_s5 + $0x218] ss:$24 sps:$4 sm:$0xff]   ;;  %v3140_v1 = vld [vmem:[%s3549_s5 + $0x254] ss:$24 sps:$4 sm:$0xff]  }
  0xb9   : > { %1366 = vmatmul.mubr.bf16.gmra.mrb[20].mxu0 %v3040_v6  ;;  %1430 = vmatmul.mubr.bf16.gmra.mrb[20].mxu1 %v3041_v7  ;;  %v3148_v6 = vld [vmem:[%s3549_s5 + $0x278] ss:$24 sps:$4 sm:$0xff]  }
  0xba   : > { %1373 = vmatprep.mubr.bf16.mxu0 %v3046_v8  ;;  %1437 = vmatprep.mubr.bf16.mxu1 %v3048_v9  ;;  %v3149_v7 = vld [vmem:[%s3549_s5 + $0x280] ss:$24 sps:$4 sm:$0xff]   ;;  %v3150_v8 = vld [vmem:[%s3549_s5 + $0x2ac] ss:$24 sps:$4 sm:$0xff]  }
  0xbb   : > { %v3152_v9 = vld [vmem:[%s3549_s5 + $0x2b4] ss:$24 sps:$4 sm:$0xff]  }
  0xc1   : > { %1374 = vmatmul.mubr.bf16.gmra.mrb[24].mxu0 %v3050_v10  ;;  %1438 = vmatmul.mubr.bf16.gmra.mrb[24].mxu1 %v3051_v11  ;;  %v3154_v10 = vld [vmem:[%s3549_s5 + $0x2a8] ss:$24 sps:$4 sm:$0xff]  }
  0xc2   : > { %1381 = vmatprep.mubr.bf16.mxu0 %v3056_v12  ;;  %1445 = vmatprep.mubr.bf16.mxu1 %v3058_v13  ;;  %v3155_v11 = vld [vmem:[%s3549_s5 + $0x2b0] ss:$24 sps:$4 sm:$0xff]   ;;  %v3156_v12 = vld [vmem:[%s3549_s5 + $0x2dc] ss:$24 sps:$4 sm:$0xff]  }
  0xc3   : > { %v3158_v13 = vld [vmem:[%s3549_s5 + $0x2e4] ss:$24 sps:$4 sm:$0xff]  }
  0xc9   : > { %1382 = vmatmul.mubr.bf16.gmra.mrb[28].mxu0 %v3060_v14  ;;  %1446 = vmatmul.mubr.bf16.gmra.mrb[28].mxu1 %v3061_v15  ;;  %v3160_v14 = vld [vmem:[%s3549_s5 + $0x2d8] ss:$24 sps:$4 sm:$0xff]  }
  0xca   : > { %1486 = vmatprep.mubr.bf16.mxu1 %v3068_v16  ;;  %1647 = vmatprep.mubr.bf16.mxu0 %v3071_v17  ;;  %v3161_v15 = vld [vmem:[%s3549_s5 + $0x2e0] ss:$24 sps:$4 sm:$0xff]  }
  0xd1   : > { %1487 = vmatmul.mubr.bf16.vlgmr.msra.gmra.mrb[32].mxu1 %v3066_v18  ;;  %1648 = vmatmul.mubr.bf16.vlgmr.msra.gmra.mrb[32].mxu0 %v3069_v19 }
  0xd2   : > { %1494 = vmatprep.mubr.bf16.mxu1 %v3072_v20  ;;  %1655 = vmatprep.mubr.bf16.mxu0 %v3074_v21 }
  0xd9   : > { %1495 = vmatmul.mubr.bf16.gmra.mrb[36].mxu1 %v3076_v22  ;;  %1656 = vmatmul.mubr.bf16.gmra.mrb[36].mxu0 %v3077_v23 }
  0xda   : > { %1502 = vmatprep.mubr.bf16.mxu1 %v3078_v24  ;;  %1663 = vmatprep.mubr.bf16.mxu0 %v3080_v25 }
  0xe1   : > { %1503 = vmatmul.mubr.bf16.gmra.mrb[40].mxu1 %v3082_v26  ;;  %1664 = vmatmul.mubr.bf16.gmra.mrb[40].mxu0 %v3083_v27 }
  0xe2   : > { %1510 = vmatprep.mubr.bf16.mxu1 %v3084_v28  ;;  %1671 = vmatprep.mubr.bf16.mxu0 %v3086_v29 }
  0xe9   : > { %1511 = vmatmul.mubr.bf16.gmra.mrb[44].mxu1 %v3088_v30  ;;  %1672 = vmatmul.mubr.bf16.gmra.mrb[44].mxu0 %v3089_v31 }
  0xea   : > { %1518 = vmatprep.mubr.bf16.mxu1 %v3090_v32  ;;  %1679 = vmatprep.mubr.bf16.mxu0 %v3092_v33 }
  0xf1   : > { %1519 = vmatmul.mubr.bf16.gmra.mrb[48].mxu1 %v3094_v34  ;;  %1680 = vmatmul.mubr.bf16.gmra.mrb[48].mxu0 %v3095_v35 }
  0xf2   : > { %1526 = vmatprep.mubr.bf16.mxu1 %v3096_v36  ;;  %1687 = vmatprep.mubr.bf16.mxu0 %v3098_v37 }
  0xf9   : > { %1527 = vmatmul.mubr.bf16.gmra.mrb[52].mxu1 %v3100_v38  ;;  %1688 = vmatmul.mubr.bf16.gmra.mrb[52].mxu0 %v3101_v39 }
  0xfa   : > { %1534 = vmatprep.mubr.bf16.mxu1 %v3102_v40  ;;  %1695 = vmatprep.mubr.bf16.mxu0 %v3104_v41 }
 0x101   : > { %1535 = vmatmul.mubr.bf16.gmra.mrb[56].mxu1 %v3106_v42  ;;  %1696 = vmatmul.mubr.bf16.gmra.mrb[56].mxu0 %v3107_v43 }
 0x102   : > { %1542 = vmatprep.mubr.bf16.mxu1 %v3108_v44  ;;  %1703 = vmatprep.mubr.bf16.mxu0 %v3110_v45 }
 0x109   : > { %1543 = vmatmul.mubr.bf16.gmra.mrb[60].mxu1 %v3112_v46  ;;  %1704 = vmatmul.mubr.bf16.gmra.mrb[60].mxu0 %v3113_v47 }
 0x10a   : > { %1550 = vmatprep.mubr.bf16.mxu1 %v3114_v48  ;;  %1711 = vmatprep.mubr.bf16.mxu0 %v3116_v49 }
 0x111   : > { %1551 = vmatmul.mubr.bf16.gmra.mrb[64].mxu1 %v3118_v50  ;;  %1712 = vmatmul.mubr.bf16.gmra.mrb[64].mxu0 %v3119_v51 }
 0x112   : > { %1558 = vmatprep.mubr.bf16.mxu1 %v3120_v52  ;;  %1719 = vmatprep.mubr.bf16.mxu0 %v3122_v53 }
 0x119   : > { %1559 = vmatmul.mubr.bf16.gmra.mrb[68].mxu1 %v3124_v54  ;;  %1720 = vmatmul.mubr.bf16.gmra.mrb[68].mxu0 %v3125_v55 }
 0x11a   : > { %1566 = vmatprep.mubr.bf16.mxu1 %v3126_v56  ;;  %1727 = vmatprep.mubr.bf16.mxu0 %v3128_v57 }
 0x121   : > { %1567 = vmatmul.mubr.bf16.gmra.mrb[72].mxu1 %v3130_v58  ;;  %1728 = vmatmul.mubr.bf16.gmra.mrb[72].mxu0 %v3131_v59 }
 0x122   : > { %1574 = vmatprep.mubr.bf16.mxu1 %v3132_v60  ;;  %1735 = vmatprep.mubr.bf16.mxu0 %v3134_v61 }
 0x129   : > { %1575 = vmatmul.mubr.bf16.gmra.mrb[76].mxu1 %v3136_v62  ;;  %1736 = vmatmul.mubr.bf16.gmra.mrb[76].mxu0 %v3137_v63 }
 0x12a   : > { %1582 = vmatprep.mubr.bf16.mxu1 %v3138_v0  ;;  %1743 = vmatprep.mubr.bf16.mxu0 %v3140_v1 }
 0x131   : > { %1583 = vmatmul.mubr.bf16.gmra.mrb[80].mxu1 %v3142_v2  ;;  %1744 = vmatmul.mubr.bf16.gmra.mrb[80].mxu0 %v3143_v3 }
 0x132   : > { %1590 = vmatprep.mubr.bf16.mxu1 %v3144_v4  ;;  %1751 = vmatprep.mubr.bf16.mxu0 %v3146_v5 }
 0x139   : > { %1591 = vmatmul.mubr.bf16.gmra.mrb[84].mxu1 %v3148_v6  ;;  %1752 = vmatmul.mubr.bf16.gmra.mrb[84].mxu0 %v3149_v7 }
 0x13a   : > { %1598 = vmatprep.mubr.bf16.mxu1 %v3150_v8  ;;  %1759 = vmatprep.mubr.bf16.mxu0 %v3152_v9 }
 0x141   : > { %1599 = vmatmul.mubr.bf16.gmra.mrb[88].mxu1 %v3154_v10  ;;  %1760 = vmatmul.mubr.bf16.gmra.mrb[88].mxu0 %v3155_v11 }
 0x142   : > { %1606 = vmatprep.mubr.bf16.mxu1 %v3156_v12  ;;  %1767 = vmatprep.mubr.bf16.mxu0 %v3158_v13 }
 0x149   : > { %1607 = vmatmul.mubr.bf16.gmra.mrb[92].mxu1 %v3160_v14  ;;  %1768 = vmatmul.mubr.bf16.gmra.mrb[92].mxu0 %v3161_v15 }
 0x164   : > { %v2542_v16 = vpop.f32.mrb[0].mxu0  ;;  %v2590_v17 = vpop.f32.mrb[0].mxu1 }
 0x165   : > { %v2543_v18 = vpop.f32.mrb[1].mxu0  ;;  %v2591_v19 = vpop.f32.mrb[1].mxu1 }
 0x166   : > { %v3655_v20 = vadd.f32 %v2543_v18, %v2542_v16  ;;  %v3657_v21 = vadd.f32 %v2591_v19, %v2590_v17  ;;  %v2545_v22 = vpop.f32.mrb[2].mxu0  ;;  %v2593_v23 = vpop.f32.mrb[2].mxu1 }
 0x167   : > { %v2546_v24 = vpop.f32.mrb[3].mxu0  ;;  %v2594_v25 = vpop.f32.mrb[3].mxu1 }
 0x168   : > { %v3659_v26 = vadd.f32 %v2546_v24, %v2545_v22  ;;  %v3661_v27 = vadd.f32 %v2594_v25, %v2593_v23 }
 0x16c   : > { %v2548_v28 = vpop.f32.mrb[4].mxu0  ;;  %v2596_v29 = vpop.f32.mrb[4].mxu1 }
 0x16d   : > { %v2549_v30 = vpop.f32.mrb[5].mxu0  ;;  %v2597_v31 = vpop.f32.mrb[5].mxu1 }
 0x16e   : > { %v3663_v32 = vadd.f32 %v2549_v30, %v2548_v28  ;;  %v3665_v33 = vadd.f32 %v2597_v31, %v2596_v29  ;;  %v2551_v34 = vpop.f32.mrb[6].mxu0  ;;  %v2599_v35 = vpop.f32.mrb[6].mxu1 }
 0x16f   : > { %v2552_v36 = vpop.f32.mrb[7].mxu0  ;;  %v2600_v37 = vpop.f32.mrb[7].mxu1 }
 0x170   : > { %v3667_v38 = vadd.f32 %v2552_v36, %v2551_v34  ;;  %v3669_v39 = vadd.f32 %v2600_v37, %v2599_v35 }
 0x174   : > { %v2554_v40 = vpop.f32.mrb[8].mxu0  ;;  %v2602_v41 = vpop.f32.mrb[8].mxu1 }
 0x175   : > { %v2555_v42 = vpop.f32.mrb[9].mxu0  ;;  %v2603_v43 = vpop.f32.mrb[9].mxu1 }
 0x176   : > { %v3671_v44 = vadd.f32 %v2555_v42, %v2554_v40  ;;  %v3673_v45 = vadd.f32 %v2603_v43, %v2602_v41  ;;  %v2557_v46 = vpop.f32.mrb[10].mxu0  ;;  %v2605_v47 = vpop.f32.mrb[10].mxu1 }
 0x177   : > { %v2558_v48 = vpop.f32.mrb[11].mxu0  ;;  %v2606_v49 = vpop.f32.mrb[11].mxu1 }
 0x178   : > { %v3675_v50 = vadd.f32 %v2558_v48, %v2557_v46  ;;  %v3677_v51 = vadd.f32 %v2606_v49, %v2605_v47 }
 0x17c   : > { %v2560_v52 = vpop.f32.mrb[12].mxu0  ;;  %v2608_v53 = vpop.f32.mrb[12].mxu1 }
 0x17d   : > { %v2561_v54 = vpop.f32.mrb[13].mxu0  ;;  %v2609_v55 = vpop.f32.mrb[13].mxu1 }
 0x17e   : > { %v3679_v56 = vadd.f32 %v2561_v54, %v2560_v52  ;;  %v3681_v57 = vadd.f32 %v2609_v55, %v2608_v53  ;;  %v2563_v58 = vpop.f32.mrb[14].mxu0  ;;  %v2611_v59 = vpop.f32.mrb[14].mxu1 }
 0x17f   : > { %v2564_v60 = vpop.f32.mrb[15].mxu0  ;;  %v2612_v61 = vpop.f32.mrb[15].mxu1 }
 0x180   : > { %v3683_v62 = vadd.f32 %v2564_v60, %v2563_v58  ;;  %v3685_v63 = vadd.f32 %v2612_v61, %v2611_v59 }
 0x184   : > { %v2566_v0 = vpop.f32.mrb[16].mxu0  ;;  %v2614_v1 = vpop.f32.mrb[16].mxu1 }
 0x185   : > { %v2567_v2 = vpop.f32.mrb[17].mxu0  ;;  %v2615_v3 = vpop.f32.mrb[17].mxu1 }
 0x186   : > { %v3687_v4 = vadd.f32 %v2567_v2, %v2566_v0  ;;  %v3689_v5 = vadd.f32 %v2615_v3, %v2614_v1  ;;  %v2569_v6 = vpop.f32.mrb[18].mxu0  ;;  %v2617_v7 = vpop.f32.mrb[18].mxu1 }
 0x187   : > { %v2570_v8 = vpop.f32.mrb[19].mxu0  ;;  %v2618_v9 = vpop.f32.mrb[19].mxu1 }
 0x188   : > { %v3691_v10 = vadd.f32 %v2570_v8, %v2569_v6  ;;  %v3693_v11 = vadd.f32 %v2618_v9, %v2617_v7 }
 0x18c   : > { %v2572_v12 = vpop.f32.mrb[20].mxu0  ;;  %v2620_v13 = vpop.f32.mrb[20].mxu1 }
 0x18d   : > { %v2573_v14 = vpop.f32.mrb[21].mxu0  ;;  %v2621_v15 = vpop.f32.mrb[21].mxu1 }
 0x18e   : > { %v3695_v16 = vadd.f32 %v2573_v14, %v2572_v12  ;;  %v3697_v17 = vadd.f32 %v2621_v15, %v2620_v13  ;;  %v2575_v18 = vpop.f32.mrb[22].mxu0  ;;  %v2623_v19 = vpop.f32.mrb[22].mxu1 }
 0x18f   : > { %v2576_v22 = vpop.f32.mrb[23].mxu0  ;;  %v2624_v23 = vpop.f32.mrb[23].mxu1 }
 0x190   : > { %v3699_v24 = vadd.f32 %v2576_v22, %v2575_v18  ;;  %v3701_v25 = vadd.f32 %v2624_v23, %v2623_v19  ;;  %v3721_v23 = vld [vmem:[#allocation8] ss:$0 sm:$0xff] }
 0x194   : > { %v2578_v28 = vpop.f32.mrb[24].mxu0  ;;  %v2626_v29 = vpop.f32.mrb[24].mxu1 }
 0x195   : > { %v2579_v30 = vpop.f32.mrb[25].mxu0  ;;  %v2627_v31 = vpop.f32.mrb[25].mxu1 }
 0x196   : > { %v3703_v34 = vadd.f32 %v2579_v30, %v2578_v28  ;;  %v3705_v35 = vadd.f32 %v2627_v31, %v2626_v29  ;;  %v2581_v36 = vpop.f32.mrb[26].mxu0  ;;  %v2629_v37 = vpop.f32.mrb[26].mxu1 }
 0x197   : > { %v2582_v40 = vpop.f32.mrb[27].mxu0  ;;  %v2630_v41 = vpop.f32.mrb[27].mxu1 }
 0x198   : > { %v3707_v42 = vadd.f32 %v2582_v40, %v2581_v36  ;;  %v3709_v43 = vadd.f32 %v2630_v41, %v2629_v37 }
 0x19c   : > { %v2584_v46 = vpop.f32.mrb[28].mxu0  ;;  %v2632_v47 = vpop.f32.mrb[28].mxu1 }
 0x19d   : > { %v2585_v48 = vpop.f32.mrb[29].mxu0  ;;  %v2633_v49 = vpop.f32.mrb[29].mxu1 }
 0x19e   : > { %v3711_v52 = vadd.f32 %v2585_v48, %v2584_v46  ;;  %v3713_v53 = vadd.f32 %v2633_v49, %v2632_v47  ;;  %v2587_v54 = vpop.f32.mrb[30].mxu0  ;;  %v2635_v55 = vpop.f32.mrb[30].mxu1 }
 0x19f   : > { %v2588_v58 = vpop.f32.mrb[31].mxu0  ;;  %v2636_v59 = vpop.f32.mrb[31].mxu1 }
 0x1a0   : > { %v3715_v60 = vadd.f32 %v2588_v58, %v2587_v54  ;;  %v3717_v61 = vadd.f32 %v2636_v59, %v2635_v55 }
 0x1a4   : > { %v2654_v0 = vpop.f32.mrb[32].mxu1  ;;  %v2766_v1 = vpop.f32.mrb[32].mxu0 }
 0x1a5   : > { %v2655_v2 = vpop.f32.mrb[33].mxu1  ;;  %v2767_v3 = vpop.f32.mrb[33].mxu0 }
 0x1a6   : > { %v2656_v6 = vadd.f32 %v2655_v2, %v2654_v0  ;;  %v2768_v7 = vadd.f32 %v2767_v3, %v2766_v1  ;;  %v2657_v8 = vpop.f32.mrb[34].mxu1  ;;  %v2769_v9 = vpop.f32.mrb[34].mxu0 }
 0x1a7   : > { %v2658_v12 = vpop.f32.mrb[35].mxu1  ;;  %v2770_v13 = vpop.f32.mrb[35].mxu0 }
 0x1a8   : > { %v1489_v14 = vadd.f32 %v2656_v6, %v3655_v20  ;;  %v2659_v15 = vadd.f32 %v2658_v12, %v2657_v8  ;;  %v2771_v18 = vadd.f32 %v2770_v13, %v2769_v9 }
 0x1aa   : > { %v1650_v19 = vadd.f32 %v2768_v7, %v1489_v14  ;;  %v1492_v22 = vadd.f32 %v2659_v15, %v3659_v26 }
 0x1ac   : > { %v1653_v28 = vadd.f32 %v2771_v18, %v1492_v22  ;;  %v2660_v29 = vpop.f32.mrb[36].mxu1  ;;  %v2772_v30 = vpop.f32.mrb[36].mxu0  ;;  %v1882_v37 = vadd.f32 %v3721_v23, %v1650_v19 }
 0x1ad   : > { %v2661_v31 = vpop.f32.mrb[37].mxu1  ;;  %v2773_v36 = vpop.f32.mrb[37].mxu0 }
 0x1ae   : > { %v1883_v40 = vadd.f32 %v3721_v23, %v1653_v28  ;;  %v2662_v41 = vadd.f32 %v2661_v31, %v2660_v29  ;;  %v2774_v46 = vadd.f32 %v2773_v36, %v2772_v30  ;;  %v2663_v20 = vpop.f32.mrb[38].mxu1  ;;  %v2775_v47 = vpop.f32.mrb[38].mxu0 }
 0x1af   : > { %v2664_v48 = vpop.f32.mrb[39].mxu1  ;;  %v2776_v49 = vpop.f32.mrb[39].mxu0 }
 0x1b0   : > { %v2434_v54 = vpack.c.bf16 %v1883_v40, %v1882_v37  ;;  %v1497_v26 = vadd.f32 %v2662_v41, %v3663_v32  ;;  %v2665_v55 = vadd.f32 %v2664_v48, %v2663_v20  ;;  %v2777_v58 = vadd.f32 %v2776_v49, %v2775_v47 }
 0x1b2   : > { %2435 = vst [vmem:[%s3727_s22] sm:$0xff] %v2434_v54   ;;  %v1658_v59 = vadd.f32 %v2774_v46, %v1497_v26  ;;  %v1500_v0 = vadd.f32 %v2665_v55, %v3667_v38 }
 0x1b4   : > { %v1661_v1 = vadd.f32 %v2777_v58, %v1500_v0  ;;  %v2666_v2 = vpop.f32.mrb[40].mxu1  ;;  %v2778_v3 = vpop.f32.mrb[40].mxu0  ;;  %v1884_v8 = vadd.f32 %v3721_v23, %v1658_v59 }
 0x1b5   : > { %v2667_v6 = vpop.f32.mrb[41].mxu1  ;;  %v2779_v7 = vpop.f32.mrb[41].mxu0 }
 0x1b6   : > { %v1885_v9 = vadd.f32 %v3721_v23, %v1661_v1  ;;  %v2668_v32 = vadd.f32 %v2667_v6, %v2666_v2  ;;  %v2780_v12 = vadd.f32 %v2779_v7, %v2778_v3  ;;  %v2669_v13 = vpop.f32.mrb[42].mxu1  ;;  %v2781_v14 = vpop.f32.mrb[42].mxu0 }
 0x1b7   : > { %v2670_v15 = vpop.f32.mrb[43].mxu1  ;;  %v2782_v18 = vpop.f32.mrb[43].mxu0 }
 0x1b8   : > { %v2439_v19 = vpack.c.bf16 %v1885_v9, %v1884_v8  ;;  %v1505_v22 = vadd.f32 %v2668_v32, %v3671_v44  ;;  %v2671_v38 = vadd.f32 %v2670_v15, %v2669_v13  ;;  %v2783_v28 = vadd.f32 %v2782_v18, %v2781_v14 }
 0x1ba   : > { %2511 = vst [vmem:[%s3727_s22 + $0x8] sm:$0xff] %v2439_v19   ;;  %v1666_v29 = vadd.f32 %v2780_v12, %v1505_v22  ;;  %v1508_v30 = vadd.f32 %v2671_v38, %v3675_v50 }
 0x1bc   : > { %v1669_v31 = vadd.f32 %v2783_v28, %v1508_v30  ;;  %v2672_v36 = vpop.f32.mrb[44].mxu1  ;;  %v2784_v37 = vpop.f32.mrb[44].mxu0  ;;  %v1886_v46 = vadd.f32 %v3721_v23, %v1666_v29 }
 0x1bd   : > { %v2673_v40 = vpop.f32.mrb[45].mxu1  ;;  %v2785_v41 = vpop.f32.mrb[45].mxu0 }
 0x1be   : > { %v1887_v20 = vadd.f32 %v3721_v23, %v1669_v31  ;;  %v2674_v47 = vadd.f32 %v2673_v40, %v2672_v36  ;;  %v2786_v48 = vadd.f32 %v2785_v41, %v2784_v37  ;;  %v2675_v49 = vpop.f32.mrb[46].mxu1  ;;  %v2787_v44 = vpop.f32.mrb[46].mxu0 }
 0x1bf   : > { %v2676_v54 = vpop.f32.mrb[47].mxu1  ;;  %v2788_v26 = vpop.f32.mrb[47].mxu0 }
 0x1c0   : > { %v2444_v55 = vpack.c.bf16 %v1887_v20, %v1886_v46  ;;  %v1513_v58 = vadd.f32 %v2674_v47, %v3679_v56  ;;  %v2677_v50 = vadd.f32 %v2676_v54, %v2675_v49  ;;  %v2789_v59 = vadd.f32 %v2788_v26, %v2787_v44 }
 0x1c2   : > { %2512 = vst [vmem:[%s3727_s22 + $0x10] sm:$0xff] %v2444_v55   ;;  %v1674_v0 = vadd.f32 %v2786_v48, %v1513_v58  ;;  %v1516_v1 = vadd.f32 %v2677_v50, %v3683_v62 }
 0x1c4   : > { %v1677_v2 = vadd.f32 %v2789_v59, %v1516_v1  ;;  %v2678_v3 = vpop.f32.mrb[48].mxu1  ;;  %v2790_v6 = vpop.f32.mrb[48].mxu0  ;;  %v1888_v9 = vadd.f32 %v3721_v23, %v1674_v0 }
 0x1c5   : > { %v2679_v7 = vpop.f32.mrb[49].mxu1  ;;  %v2791_v8 = vpop.f32.mrb[49].mxu0 }
 0x1c6   : > { %v1889_v32 = vadd.f32 %v3721_v23, %v1677_v2  ;;  %v2680_v12 = vadd.f32 %v2679_v7, %v2678_v3  ;;  %v2792_v13 = vadd.f32 %v2791_v8, %v2790_v6  ;;  %v2681_v14 = vpop.f32.mrb[50].mxu1  ;;  %v2793_v56 = vpop.f32.mrb[50].mxu0 }
 0x1c7   : > { %v2682_v15 = vpop.f32.mrb[51].mxu1  ;;  %v2794_v18 = vpop.f32.mrb[51].mxu0 }
 0x1c8   : > { %v2449_v19 = vpack.c.bf16 %v1889_v32, %v1888_v9  ;;  %v1521_v22 = vadd.f32 %v2680_v12, %v3687_v4  ;;  %v2683_v62 = vadd.f32 %v2682_v15, %v2681_v14  ;;  %v2795_v38 = vadd.f32 %v2794_v18, %v2793_v56 }
 0x1ca   : > { %2513 = vst [vmem:[%s3727_s22 + $0x18] sm:$0xff] %v2449_v19   ;;  %v1682_v28 = vadd.f32 %v2792_v13, %v1521_v22  ;;  %v1524_v29 = vadd.f32 %v2683_v62, %v3691_v10 }
 0x1cc   : > { %v1685_v30 = vadd.f32 %v2795_v38, %v1524_v29  ;;  %v2684_v31 = vpop.f32.mrb[52].mxu1  ;;  %v2796_v36 = vpop.f32.mrb[52].mxu0  ;;  %v1890_v41 = vadd.f32 %v3721_v23, %v1682_v28 }
 0x1cd   : > { %v2685_v37 = vpop.f32.mrb[53].mxu1  ;;  %v2797_v40 = vpop.f32.mrb[53].mxu0 }
 0x1ce   : > { %v1891_v46 = vadd.f32 %v3721_v23, %v1685_v30  ;;  %v2686_v20 = vadd.f32 %v2685_v37, %v2684_v31  ;;  %v2798_v47 = vadd.f32 %v2797_v40, %v2796_v36  ;;  %v2687_v48 = vpop.f32.mrb[54].mxu1  ;;  %v2799_v4 = vpop.f32.mrb[54].mxu0 }
 0x1cf   : > { %v2688_v49 = vpop.f32.mrb[55].mxu1  ;;  %v2800_v44 = vpop.f32.mrb[55].mxu0 }
 0x1d0   : > { %v2454_v54 = vpack.c.bf16 %v1891_v46, %v1890_v41  ;;  %v1529_v26 = vadd.f32 %v2686_v20, %v3695_v16  ;;  %v2689_v10 = vadd.f32 %v2688_v49, %v2687_v48  ;;  %v2801_v55 = vadd.f32 %v2800_v44, %v2799_v4 }
 0x1d2   : > { %2514 = vst [vmem:[%s3727_s22 + $0x20] sm:$0xff] %v2454_v54   ;;  %v1690_v58 = vadd.f32 %v2798_v47, %v1529_v26  ;;  %v1532_v50 = vadd.f32 %v2689_v10, %v3699_v24 }
 0x1d4   : > { %v1693_v59 = vadd.f32 %v2801_v55, %v1532_v50  ;;  %v2690_v0 = vpop.f32.mrb[56].mxu1  ;;  %v2802_v1 = vpop.f32.mrb[56].mxu0  ;;  %v1892_v6 = vadd.f32 %v3721_v23, %v1690_v58 }
 0x1d5   : > { %v2691_v2 = vpop.f32.mrb[57].mxu1  ;;  %v2803_v3 = vpop.f32.mrb[57].mxu0 }
 0x1d6   : > { %v1893_v7 = vadd.f32 %v3721_v23, %v1693_v59  ;;  %v2692_v8 = vadd.f32 %v2691_v2, %v2690_v0  ;;  %v2804_v9 = vadd.f32 %v2803_v3, %v2802_v1  ;;  %v2693_v32 = vpop.f32.mrb[58].mxu1  ;;  %v2805_v16 = vpop.f32.mrb[58].mxu0 }
 0x1d7   : > { %v2694_v12 = vpop.f32.mrb[59].mxu1  ;;  %v2806_v13 = vpop.f32.mrb[59].mxu0 }
 0x1d8   : > { %v2459_v14 = vpack.c.bf16 %v1893_v7, %v1892_v6  ;;  %v1537_v56 = vadd.f32 %v2692_v8, %v3703_v34  ;;  %v2695_v24 = vadd.f32 %v2694_v12, %v2693_v32  ;;  %v2807_v15 = vadd.f32 %v2806_v13, %v2805_v16 }
 0x1da   : > { %2515 = vst [vmem:[%s3727_s22 + $0x28] sm:$0xff] %v2459_v14   ;;  %v1698_v18 = vadd.f32 %v2804_v9, %v1537_v56  ;;  %v1540_v19 = vadd.f32 %v2695_v24, %v3707_v42 }
 0x1dc   : > { %v1701_v22 = vadd.f32 %v2807_v15, %v1540_v19  ;;  %v2696_v62 = vpop.f32.mrb[60].mxu1  ;;  %v2808_v38 = vpop.f32.mrb[60].mxu0  ;;  %v1894_v30 = vadd.f32 %v3721_v23, %v1698_v18 }
 0x1dd   : > { %v2697_v28 = vpop.f32.mrb[61].mxu1  ;;  %v2809_v29 = vpop.f32.mrb[61].mxu0 }
 0x1de   : > { %v1895_v31 = vadd.f32 %v3721_v23, %v1701_v22  ;;  %v2698_v36 = vadd.f32 %v2697_v28, %v2696_v62  ;;  %v2810_v37 = vadd.f32 %v2809_v29, %v2808_v38  ;;  %v2699_v40 = vpop.f32.mrb[62].mxu1  ;;  %v2811_v34 = vpop.f32.mrb[62].mxu0 }
 0x1df   : > { %v2700_v41 = vpop.f32.mrb[63].mxu1  ;;  %v2812_v46 = vpop.f32.mrb[63].mxu0 }
 0x1e0   : > { %v2464_v20 = vpack.c.bf16 %v1895_v31, %v1894_v30  ;;  %v1545_v47 = vadd.f32 %v2698_v36, %v3711_v52  ;;  %v2701_v42 = vadd.f32 %v2700_v41, %v2699_v40  ;;  %v2813_v48 = vadd.f32 %v2812_v46, %v2811_v34 }
 0x1e2   : > { %2516 = vst [vmem:[%s3727_s22 + $0x30] sm:$0xff] %v2464_v20   ;;  %v1706_v4 = vadd.f32 %v2810_v37, %v1545_v47  ;;  %v1548_v49 = vadd.f32 %v2701_v42, %v3715_v60 }
 0x1e4   : > { %v1709_v44 = vadd.f32 %v2813_v48, %v1548_v49  ;;  %v2702_v54 = vpop.f32.mrb[64].mxu1  ;;  %v2814_v26 = vpop.f32.mrb[64].mxu0  ;;  %v1896_v58 = vadd.f32 %v3721_v23, %v1706_v4 }
 0x1e5   : > { %v2703_v10 = vpop.f32.mrb[65].mxu1  ;;  %v2815_v55 = vpop.f32.mrb[65].mxu0 }
 0x1e6   : > { %v1897_v50 = vadd.f32 %v3721_v23, %v1709_v44  ;;  %v2704_v59 = vadd.f32 %v2703_v10, %v2702_v54  ;;  %v2816_v0 = vadd.f32 %v2815_v55, %v2814_v26  ;;  %v2705_v1 = vpop.f32.mrb[66].mxu1  ;;  %v2817_v52 = vpop.f32.mrb[66].mxu0 }
 0x1e7   : > { %v2706_v2 = vpop.f32.mrb[67].mxu1  ;;  %v2818_v3 = vpop.f32.mrb[67].mxu0 }
 0x1e8   : > { %v2469_v6 = vpack.c.bf16 %v1897_v50, %v1896_v58  ;;  %v1553_v7 = vadd.f32 %v2704_v59, %v3657_v21  ;;  %v2707_v60 = vadd.f32 %v2706_v2, %v2705_v1  ;;  %v2819_v8 = vadd.f32 %v2818_v3, %v2817_v52 }
 0x1ea   : > { %2517 = vst [vmem:[%s3727_s22 + $0x38] sm:$0xff] %v2469_v6   ;;  %v1714_v9 = vadd.f32 %v2816_v0, %v1553_v7  ;;  %v1556_v32 = vadd.f32 %v2707_v60, %v3661_v27 }
 0x1ec   : > { %v1717_v16 = vadd.f32 %v2819_v8, %v1556_v32  ;;  %v2708_v12 = vpop.f32.mrb[68].mxu1  ;;  %v2820_v13 = vpop.f32.mrb[68].mxu0  ;;  %v1898_v24 = vadd.f32 %v3721_v23, %v1714_v9 }
 0x1ed   : > { %v2709_v14 = vpop.f32.mrb[69].mxu1  ;;  %v2821_v56 = vpop.f32.mrb[69].mxu0 }
 0x1ee   : > { %v1899_v15 = vadd.f32 %v3721_v23, %v1717_v16  ;;  %v2710_v18 = vadd.f32 %v2709_v14, %v2708_v12  ;;  %v2822_v19 = vadd.f32 %v2821_v56, %v2820_v13  ;;  %v2711_v22 = vpop.f32.mrb[70].mxu1  ;;  %v2823_v21 = vpop.f32.mrb[70].mxu0 }
 0x1ef   : > { %v2712_v62 = vpop.f32.mrb[71].mxu1  ;;  %v2824_v38 = vpop.f32.mrb[71].mxu0 }
 0x1f0   : > { %v2474_v28 = vpack.c.bf16 %v1899_v15, %v1898_v24  ;;  %v1561_v29 = vadd.f32 %v2710_v18, %v3665_v33  ;;  %v2713_v27 = vadd.f32 %v2712_v62, %v2711_v22  ;;  %v2825_v30 = vadd.f32 %v2824_v38, %v2823_v21 }
 0x1f2   : > { %2518 = vst [vmem:[%s3727_s22 + $0x40] sm:$0xff] %v2474_v28   ;;  %v1722_v31 = vadd.f32 %v2822_v19, %v1561_v29  ;;  %v1564_v36 = vadd.f32 %v2713_v27, %v3669_v39 }
 0x1f4   : > { %v1725_v37 = vadd.f32 %v2825_v30, %v1564_v36  ;;  %v2714_v40 = vpop.f32.mrb[72].mxu1  ;;  %v2826_v34 = vpop.f32.mrb[72].mxu0  ;;  %v1900_v20 = vadd.f32 %v3721_v23, %v1722_v31 }
 0x1f5   : > { %v2715_v41 = vpop.f32.mrb[73].mxu1  ;;  %v2827_v46 = vpop.f32.mrb[73].mxu0 }
 0x1f6   : > { %v1901_v47 = vadd.f32 %v3721_v23, %v1725_v37  ;;  %v2716_v42 = vadd.f32 %v2715_v41, %v2714_v40  ;;  %v2828_v48 = vadd.f32 %v2827_v46, %v2826_v34  ;;  %v2717_v4 = vpop.f32.mrb[74].mxu1  ;;  %v2829_v33 = vpop.f32.mrb[74].mxu0 }
 0x1f7   : > { %v2718_v49 = vpop.f32.mrb[75].mxu1  ;;  %v2830_v44 = vpop.f32.mrb[75].mxu0 }
 0x1f8   : > { %v2479_v54 = vpack.c.bf16 %v1901_v47, %v1900_v20  ;;  %v1569_v26 = vadd.f32 %v2716_v42, %v3673_v45  ;;  %v2719_v39 = vadd.f32 %v2718_v49, %v2717_v4  ;;  %v2831_v10 = vadd.f32 %v2830_v44, %v2829_v33 }
 0x1fa   : > { %2519 = vst [vmem:[%s3727_s22 + $0x48] sm:$0xff] %v2479_v54   ;;  %v1730_v55 = vadd.f32 %v2828_v48, %v1569_v26  ;;  %v1572_v58 = vadd.f32 %v2719_v39, %v3677_v51 }
 0x1fc   : > { %v1733_v50 = vadd.f32 %v2831_v10, %v1572_v58  ;;  %v2720_v59 = vpop.f32.mrb[76].mxu1  ;;  %v2832_v0 = vpop.f32.mrb[76].mxu0  ;;  %v1902_v2 = vadd.f32 %v3721_v23, %v1730_v55 }
 0x1fd   : > { %v2721_v1 = vpop.f32.mrb[77].mxu1  ;;  %v2833_v52 = vpop.f32.mrb[77].mxu0 }
 0x1fe   : > { %v1903_v3 = vadd.f32 %v3721_v23, %v1733_v50  ;;  %v2722_v6 = vadd.f32 %v2721_v1, %v2720_v59  ;;  %v2834_v7 = vadd.f32 %v2833_v52, %v2832_v0  ;;  %v2723_v60 = vpop.f32.mrb[78].mxu1  ;;  %v2835_v45 = vpop.f32.mrb[78].mxu0 }
 0x1ff   : > { %v2724_v8 = vpop.f32.mrb[79].mxu1  ;;  %v2836_v9 = vpop.f32.mrb[79].mxu0 }
 0x200   : > { %v2484_v32 = vpack.c.bf16 %v1903_v3, %v1902_v2  ;;  %v1577_v16 = vadd.f32 %v2722_v6, %v3681_v57  ;;  %v2725_v51 = vadd.f32 %v2724_v8, %v2723_v60  ;;  %v2837_v12 = vadd.f32 %v2836_v9, %v2835_v45 }
 0x202   : > { %2520 = vst [vmem:[%s3727_s22 + $0x50] sm:$0xff] %v2484_v32   ;;  %v1738_v13 = vadd.f32 %v2834_v7, %v1577_v16  ;;  %v1580_v14 = vadd.f32 %v2725_v51, %v3685_v63 }
 0x204   : > { %v1741_v56 = vadd.f32 %v2837_v12, %v1580_v14  ;;  %v2726_v24 = vpop.f32.mrb[80].mxu1  ;;  %v2838_v15 = vpop.f32.mrb[80].mxu0  ;;  %v1904_v22 = vadd.f32 %v3721_v23, %v1738_v13 }
 0x205   : > { %v2727_v18 = vpop.f32.mrb[81].mxu1  ;;  %v2839_v19 = vpop.f32.mrb[81].mxu0 }
 0x206   : > { %v1905_v21 = vadd.f32 %v3721_v23, %v1741_v56  ;;  %v2728_v62 = vadd.f32 %v2727_v18, %v2726_v24  ;;  %v2840_v38 = vadd.f32 %v2839_v19, %v2838_v15  ;;  %v2729_v28 = vpop.f32.mrb[82].mxu1  ;;  %v2841_v57 = vpop.f32.mrb[82].mxu0 }
 0x207   : > { %v2730_v29 = vpop.f32.mrb[83].mxu1  ;;  %v2842_v27 = vpop.f32.mrb[83].mxu0 }
 0x208   : > { %v2489_v30 = vpack.c.bf16 %v1905_v21, %v1904_v22  ;;  %v1585_v31 = vadd.f32 %v2728_v62, %v3689_v5  ;;  %v2731_v63 = vadd.f32 %v2730_v29, %v2729_v28  ;;  %v2843_v36 = vadd.f32 %v2842_v27, %v2841_v57 }
 0x20a   : > { %2521 = vst [vmem:[%s3727_s22 + $0x58] sm:$0xff] %v2489_v30   ;;  %v1746_v37 = vadd.f32 %v2840_v38, %v1585_v31  ;;  %v1588_v40 = vadd.f32 %v2731_v63, %v3693_v11 }
 0x20c   : > { %v1749_v34 = vadd.f32 %v2843_v36, %v1588_v40  ;;  %v2732_v41 = vpop.f32.mrb[84].mxu1  ;;  %v2844_v46 = vpop.f32.mrb[84].mxu0  ;;  %v1906_v42 = vadd.f32 %v3721_v23, %v1746_v37 }
 0x20d   : > { %v2733_v20 = vpop.f32.mrb[85].mxu1  ;;  %v2845_v47 = vpop.f32.mrb[85].mxu0 }
 0x20e   : > { %v1907_v48 = vadd.f32 %v3721_v23, %v1749_v34  ;;  %v2734_v4 = vadd.f32 %v2733_v20, %v2732_v41  ;;  %v2846_v33 = vadd.f32 %v2845_v47, %v2844_v46  ;;  %v2735_v49 = vpop.f32.mrb[86].mxu1  ;;  %v2847_v5 = vpop.f32.mrb[86].mxu0 }
 0x20f   : > { %v2736_v44 = vpop.f32.mrb[87].mxu1  ;;  %v2848_v54 = vpop.f32.mrb[87].mxu0 }
 0x210   : > { %v2494_v26 = vpack.c.bf16 %v1907_v48, %v1906_v42  ;;  %v1593_v39 = vadd.f32 %v2734_v4, %v3697_v17  ;;  %v2737_v11 = vadd.f32 %v2736_v44, %v2735_v49  ;;  %v2849_v10 = vadd.f32 %v2848_v54, %v2847_v5 }
 0x212   : > { %2522 = vst [vmem:[%s3727_s22 + $0x60] sm:$0xff] %v2494_v26   ;;  %v1754_v55 = vadd.f32 %v2846_v33, %v1593_v39  ;;  %v1596_v58 = vadd.f32 %v2737_v11, %v3701_v25 }
 0x214   : > { %v1757_v50 = vadd.f32 %v2849_v10, %v1596_v58  ;;  %v2738_v59 = vpop.f32.mrb[88].mxu1  ;;  %v2850_v0 = vpop.f32.mrb[88].mxu0  ;;  %v1908_v2 = vadd.f32 %v3721_v23, %v1754_v55 }
 0x215   : > { %v2739_v1 = vpop.f32.mrb[89].mxu1  ;;  %v2851_v52 = vpop.f32.mrb[89].mxu0 }
 0x216   : > { %v1909_v3 = vadd.f32 %v3721_v23, %v1757_v50  ;;  %v2740_v6 = vadd.f32 %v2739_v1, %v2738_v59  ;;  %v2852_v7 = vadd.f32 %v2851_v52, %v2850_v0  ;;  %v2741_v60 = vpop.f32.mrb[90].mxu1  ;;  %v2853_v17 = vpop.f32.mrb[90].mxu0 }
 0x217   : > { %v2742_v45 = vpop.f32.mrb[91].mxu1  ;;  %v2854_v8 = vpop.f32.mrb[91].mxu0 }
 0x218   : > { %v2499_v9 = vpack.c.bf16 %v1909_v3, %v1908_v2  ;;  %v1601_v32 = vadd.f32 %v2740_v6, %v3705_v35  ;;  %v2743_v25 = vadd.f32 %v2742_v45, %v2741_v60  ;;  %v2855_v16 = vadd.f32 %v2854_v8, %v2853_v17 }
 0x21a   : > { %2523 = vst [vmem:[%s3727_s22 + $0x68] sm:$0xff] %v2499_v9   ;;  %v1762_v51 = vadd.f32 %v2852_v7, %v1601_v32  ;;  %v1604_v12 = vadd.f32 %v2743_v25, %v3709_v43 }
 0x21c   : > { %v1765_v13 = vadd.f32 %v2855_v16, %v1604_v12  ;;  %v2744_v14 = vpop.f32.mrb[92].mxu1  ;;  %v2856_v56 = vpop.f32.mrb[92].mxu0  ;;  %v1910_v18 = vadd.f32 %v3721_v23, %v1762_v51 }
 0x21d   : > { %v2745_v24 = vpop.f32.mrb[93].mxu1  ;;  %v2857_v15 = vpop.f32.mrb[93].mxu0 }
 0x21e   : > { %v1911_v19 = vadd.f32 %v3721_v23, %v1765_v13  ;;  %v2746_v22 = vadd.f32 %v2745_v24, %v2744_v14  ;;  %v2858_v35 = vadd.f32 %v2857_v15, %v2856_v56  ;;  %v2747_v21 = vpop.f32.mrb[94].mxu1  ;;  %v2859_v62 = vpop.f32.mrb[94].mxu0 }
 0x21f   : > { %v2748_v38 = vpop.f32.mrb[95].mxu1  ;;  %v2860_v28 = vpop.f32.mrb[95].mxu0 }
 0x220   : > { %v2504_v43 = vpack.c.bf16 %v1911_v19, %v1910_v18  ;;  %v1609_v57 = vadd.f32 %v2746_v22, %v3713_v53  ;;  %v2749_v29 = vadd.f32 %v2748_v38, %v2747_v21  ;;  %v2861_v27 = vadd.f32 %v2860_v28, %v2859_v62 }
 0x222   : > { %2524 = vst [vmem:[%s3727_s22 + $0x70] sm:$0xff] %v2504_v43   ;;  %v1770_v30 = vadd.f32 %v2858_v35, %v1609_v57  ;;  %v1612_v31 = vadd.f32 %v2749_v29, %v3717_v61 }
 0x224   : > { %v1773_v63 = vadd.f32 %v2861_v27, %v1612_v31  ;;  %v1912_v36 = vadd.f32 %v3721_v23, %v1770_v30 }
 0x226   : > { %v1913_v37 = vadd.f32 %v3721_v23, %v1773_v63 }
 0x228   : > { %v2509_v53 = vpack.c.bf16 %v1913_v37, %v1912_v36 }
 0x22a   : > { %2525 = vst [vmem:[%s3727_s22 + $0x78] sm:$0xff] %v2509_v53  }
 0x22b   : > { %3261 = shalt.err (!%p3258_p5)
}
 0x22c   : > { %s3262_s10 = scalar_lea.hbm %s3808_s9, 2048  ;;  %s3266_s29 = scalar_lea.hbm %s3862_s3, 16384 }
 0x22d   : > { %p3263_p9 = scmp.ne.s32.totalorder %s3808_s9, %s3262_s10  ;;  %p3267_p3 = scmp.lt.u32.totalorder %s3808_s9, %s3862_s3 }
 0x22e   : > { %p3268_p7 = scmp.lt.u32.totalorder %s3266_s29, %s3262_s10  ;;  %p3270_p1 = scmp.lt.u32.totalorder %s3262_s10, %s3808_s9 }
 0x22f   : > { %p3264_p12 = pnand %p3263_p9, %p3492_p8 }
 0x230   : > { %p3269_p10 = por %p3268_p7, %p3267_p3 }
 0x231   : > { %p3265_p11 = pneg %p3264_p12 }
 0x232   : > { %p3271_p2 = por %p3270_p1, %p3269_p10 }
 0x234   : > { %p3272_p4 = pnand %p3271_p2, %p3265_p11 }
 0x236   : > { %3275 = shalt.err (!%p3272_p4)
}
 0x237   : > { %s3344_s22 = smov 64   ;;  %s3345_s24 = smov 4  }
 0x238   : > { %2891 = dma.vmem_to_hbm [thread:$0]  (%p3492_p8), %s3810_s30, 2048, %s3808_s9, %s2075_s28, %s3344_s22, %s3344_s22, %s3345_s24  }
 0x239 PF: > { %p2913_p6 = scmp.ge.s32.totalorder %s3334_s17, 2  ;;  %s2104_s7 = sand.u32 1, %s3314_s12  }
 0x23a   : > { %p3879_p13 = scmp.ne.s32.totalorder %s3870_s23, 0  ;;  %s2105_s26 = scalar_lea.sflag [#allocation5], %s2104_s7 }
 0x23c   : > { %p2905_p0 = pnand %p2913_p6, %p3879_p13 }
 0x23e   : > { %3309 = dma.done.wait (!%p2905_p0), %s2105_s26, 2048  }
 0x23f   : > { %3311 = vsyncadd (!%p2905_p0), %s2105_s26, 4294965248  ;;  %s20_s17 = sadd.s32 1, %s3334_s17   ;;  %s3880_s12 = smov %s3318_s13 }
 0x240   : > { %p17_p5 = scmp.ge.s32.totalorder %s20_s17, 10   ;;  %s3881_s13 = smov %s3322_s14 }
 0x241   : > { %s3882_s14 = smov %s3504_s4  ;;  %s3883_s15 = smov %s3330_s16 }
 0x242   : > { %s3884_s16 = smov %s3886_s18  ;;  %19 = sbr.rel (!%p17_p5) target bundleno = 7 (0x7), region = 95 }
 0x249   :  { %2110 = vsyncpa [#allocation4], 1 }
 0x24a   :  { %2112 = vsyncpa [#allocation4 + $0x1], 1 }
 0x24b   :  { %2113 = vsyncpa [#allocation7], 1 }
 0x24c   :  { %2114 = vsyncpa [#allocation5], 1 }
 0x24d   :  { %2116 = vsyncpa [#allocation5 + $0x1], 1 }

</bundles_post_ra>
